<compile_context>
chip_gen: v6e
topology: v6e:2x2x1
jax: 0.10.0
libtpu: 0.0.40
codegen_flags: <defaults>
</compile_context>

<pallas_src>
import jax
import jax.numpy as jnp
from jax.experimental import pallas as pl
from jax.experimental.pallas import tpu as pltpu


# ---------------------------------------------------------------------------
# Kernel: one grid step processes one chunk of the batch
#   a_ref     [1, Np, Np]  bf16  symmetric-normalized adjacency (block-diag graphs)
#   x_ref     [1, Np, Fp]  bf16  node features (padded)
#   pmask_ref [1, Gp, Np]  f32   additive pooling mask: 0 for member nodes,
#                                -1e30 for non-members / padding
#   w*_ref / b*_ref              padded GCN weights (bf16) / biases (f32)
#   wl/bl                        padded linear head (Hp -> 128 lanes)
#   out_ref   [1, Gp, 128] f32   lane-dense logits (columns >=2 are zero padding)
# ---------------------------------------------------------------------------
def gcn_kernel(a_ref, x_ref, pmask_ref,
               w1_ref, b1_ref, w2_ref, b2_ref,
               w3_ref, b3_ref, w4_ref, b4_ref,
               wl_ref, bl_ref,
               out_ref):
    a = a_ref[0]                                            # [Np, Np] bf16

    def gcn_layer(h_bf16, w_ref, b_ref):
        # GCNConv: A_hat @ (H @ W) + b   (bf16 MXU inputs, f32 accumulation)
        hw = jnp.dot(h_bf16, w_ref[...], preferred_element_type=jnp.float32)
        agg = jnp.dot(a, hw.astype(jnp.bfloat16),
                      preferred_element_type=jnp.float32)
        return agg + b_ref[...]

    h = jnp.maximum(gcn_layer(x_ref[0], w1_ref, b1_ref), 0.0).astype(jnp.bfloat16)
    h = jnp.maximum(gcn_layer(h, w2_ref, b2_ref), 0.0).astype(jnp.bfloat16)
    h = jnp.maximum(gcn_layer(h, w3_ref, b3_ref), 0.0).astype(jnp.bfloat16)
    h = gcn_layer(h, w4_ref, b4_ref)                        # [Np, Hp] f32 (no relu)

    # global_max_pool: single broadcast-add of the precomputed additive mask,
    # then one sublane-max reduce over the node axis.
    pmask = pmask_ref[0]                                    # [Gp, Np] f32 {0, -1e30}
    pooled = jnp.max(h[None, :, :] + pmask[:, :, None], axis=1)   # [Gp, Hp]

    # TODO(synk): dropout(p=0.5) is identity in eval mode (training=False); a
    # training variant would use pltpu.prng_seed + pltpu.prng_random_bits.

    # Linear head, lane-dense (Hp -> 128 padded output columns).
    out = jnp.dot(pooled.astype(jnp.bfloat16), wl_ref[...],
                  preferred_element_type=jnp.float32) + bl_ref[...]
    out_ref[0] = out


# ---------------------------------------------------------------------------
# Wrapper
# ---------------------------------------------------------------------------
def gcn_forward(a_hat, x, pool_bias, params):
    """a_hat [B,Np,Np] bf16, x [B,Np,Fp] bf16, pool_bias [B,Gp,Np] f32 (0 / -1e30).
    params already padded: W* bf16, biases f32. Returns padded [B, Gp, 128] f32."""
    (w1, b1, w2, b2, w3, b3, w4, b4, wl, bl) = params
    B, Np, _ = a_hat.shape
    Fp = x.shape[2]
    Gp = pool_bias.shape[1]
    Hp = w1.shape[1]
    OUTP = wl.shape[1]

    def chunk(shape):
        return pl.BlockSpec((1,) + shape, lambda b: (b, 0, 0))

    def full2d(shape):
        return pl.BlockSpec(shape, lambda b: (0, 0))

    return pl.pallas_call(
        gcn_kernel,
        out_shape=jax.ShapeDtypeStruct((B, Gp, OUTP), jnp.float32),
        grid_spec=pltpu.PrefetchScalarGridSpec(
            num_scalar_prefetch=0,
            grid=(B,),
            in_specs=[
                chunk((Np, Np)),                       # a_hat
                chunk((Np, Fp)),                       # x
                chunk((Gp, Np)),                       # pool_bias
                full2d((Fp, Hp)), full2d((1, Hp)),     # w1, b1
                full2d((Hp, Hp)), full2d((1, Hp)),     # w2, b2
                full2d((Hp, Hp)), full2d((1, Hp)),     # w3, b3
                full2d((Hp, Hp)), full2d((1, Hp)),     # w4, b4
                full2d((Hp, OUTP)), full2d((1, OUTP)), # wl, bl
            ],
            out_specs=chunk((Gp, OUTP)),
        ),
        compiler_params=pltpu.CompilerParams(
            dimension_semantics=("parallel",),         # shards chunks across TCs (v7x)
            vmem_limit_bytes=32 << 20,
        ),
    )(a_hat, x, pool_bias, w1, b1, w2, b2, w3, b3, w4, b4, wl, bl)


# ---------------------------------------------------------------------------
# Host-side helpers: graph construction, normalization, padding, reference
# ---------------------------------------------------------------------------
def ring_edges(start, n):
    src = jnp.arange(start, start + n, dtype=jnp.int32)
    dst = jnp.concatenate([src[1:], src[:1]])
    return jnp.stack([jnp.concatenate([src, dst]),
                      jnp.concatenate([dst, src])])


def build_normalized_adjacency(edge_index, num_real, num_padded):
    # Dense A_hat = D^-1/2 (A + I) D^-1/2 (PyG GCNConv default); padded rows/cols
    # stay exactly zero so padded nodes never influence real nodes.
    a = jnp.zeros((num_padded, num_padded), jnp.float32)
    a = a.at[edge_index[0], edge_index[1]].set(1.0)
    real = (jnp.arange(num_padded) < num_real).astype(jnp.float32)
    a = a + jnp.diag(real)                      # self loops only on real nodes
    deg = jnp.sum(a, axis=1)
    d_inv_sqrt = jnp.where(deg > 0, 1.0 / jnp.sqrt(jnp.maximum(deg, 1e-12)), 0.0)
    return d_inv_sqrt[:, None] * a * d_inv_sqrt[None, :]


def pad_matrix(w, rows, cols):
    out = jnp.zeros((rows, cols), jnp.float32)
    return out.at[:w.shape[0], :w.shape[1]].set(w)


def init_params(key, in_channels, hidden, out_channels):
    ks = jax.random.split(key, 10)

    def lin(kw, kb, fi, fo):
        w = jax.random.normal(kw, (fi, fo), jnp.float32) / jnp.sqrt(fi)
        b = 0.1 * jax.random.normal(kb, (1, fo), jnp.float32)
        return w, b

    w1, b1 = lin(ks[0], ks[1], in_channels, hidden)
    w2, b2 = lin(ks[2], ks[3], hidden, hidden)
    w3, b3 = lin(ks[4], ks[5], hidden, hidden)
    w4, b4 = lin(ks[6], ks[7], hidden, hidden)
    wl, bl = lin(ks[8], ks[9], hidden, out_channels)
    return (w1, b1, w2, b2, w3, b3, w4, b4, wl, bl)


def gcn_reference(a, x, mask, params):
    # Pure-JAX f32 reference on the padded arrays (mask is {0,1} membership).
    (w1, b1, w2, b2, w3, b3, w4, b4, wl, bl) = params

    def layer(h, w, b):
        hw = jnp.einsum('bnf,fh->bnh', h, w)
        return jnp.einsum('bnm,bmh->bnh', a, hw) + b

    h = jax.nn.relu(layer(x, w1, b1))
    h = jax.nn.relu(layer(h, w2, b2))
    h = jax.nn.relu(layer(h, w3, b3))
    h = layer(h, w4, b4)
    pooled = jnp.max(h[:, None, :, :] + (mask[:, :, :, None] - 1.0) * 1e30, axis=2)
    return jnp.einsum('bgh,ho->bgo', pooled, wl) + bl


# ---------------------------------------------------------------------------
# Example run
# ---------------------------------------------------------------------------
if __name__ == "__main__":
    key = jax.random.PRNGKey(0)
    k_feat, k_param = jax.random.split(key)

    # Logical model sizes: GCN(hidden_channels=32): GCNConv(6,32) x4, Linear(32,2).
    in_channels, hidden_channels, out_channels = 6, 32, 2
    # TPU-friendly padded sizes (zero padding is exact for this model).
    FP, HP, OUTP = 8, 128, 128
    NP = 128            # padded nodes per chunk
    GP = 8              # padded graphs per chunk
    B = 4               # chunks per kernel call (grid axis)
    graph_sizes = [[9, 7, 12, 5], [8, 10, 6, 11], [13, 5, 9, 7], [6, 8, 14, 4]]
    G_REAL = 4          # real graphs per chunk

    a_chunks, mask_chunks = [], []
    for sizes in graph_sizes:
        offs = [0]
        for s in sizes:
            offs.append(offs[-1] + s)
        n_real = offs[-1]
        edge_index = jnp.concatenate(
            [ring_edges(offs[g], sizes[g]) for g in range(len(sizes))], axis=1)
        a_chunks.append(build_normalized_adjacency(edge_index, n_real, NP))
        node_graph = jnp.full((NP,), -1, jnp.int32)
        for g in range(len(sizes)):
            node_graph = node_graph.at[offs[g]:offs[g + 1]].set(g)
        mask_chunks.append(
            (node_graph[None, :] == jnp.arange(GP, dtype=jnp.int32)[:, None]
             ).astype(jnp.float32))
    a_f32 = jnp.stack(a_chunks)                 # [B, NP, NP]
    mask = jnp.stack(mask_chunks)               # [B, GP, NP]  {0,1}
    pool_bias = (mask - 1.0) * jnp.float32(1e30)  # [B, GP, NP] {0, -1e30}

    x_f32 = jax.random.normal(k_feat, (B, NP, FP), jnp.float32)
    feat_ok = (jnp.arange(FP) < in_channels).astype(jnp.float32)[None, None, :]
    node_ok = (mask.sum(axis=1) > 0).astype(jnp.float32)[:, :, None]
    x_f32 = x_f32 * feat_ok * node_ok           # zero padded features / nodes

    (w1, b1, w2, b2, w3, b3, w4, b4, wl, bl) = init_params(
        k_param, in_channels, hidden_channels, out_channels)
    params_f32 = (
        pad_matrix(w1, FP, HP), pad_matrix(b1, 1, HP),
        pad_matrix(w2, HP, HP), pad_matrix(b2, 1, HP),
        pad_matrix(w3, HP, HP), pad_matrix(b3, 1, HP),
        pad_matrix(w4, HP, HP), pad_matrix(b4, 1, HP),
        pad_matrix(wl, HP, OUTP), pad_matrix(bl, 1, OUTP),
    )
    # Weights in bf16 (even indices), biases stay f32.
    params_kernel = tuple(
        v.astype(jnp.bfloat16) if i % 2 == 0 else v
        for i, v in enumerate(params_f32))

    out_padded = gcn_forward(a_f32.astype(jnp.bfloat16),
                             x_f32.astype(jnp.bfloat16),
                             pool_bias, params_kernel)
    out_padded = jax.block_until_ready(out_padded)
    logits = out_padded[:, :G_REAL, :out_channels].reshape(B * G_REAL, out_channels)

    ref_padded = gcn_reference(a_f32, x_f32, mask, params_f32)
    ref = ref_padded[:, :G_REAL, :out_channels].reshape(B * G_REAL, out_channels)

    assert logits.shape == (B * G_REAL, out_channels)
    max_err = float(jnp.max(jnp.abs(logits - ref)))
    assert jnp.allclose(logits, ref, atol=1e-1, rtol=1e-1), (max_err, logits, ref)

    print("KERNEL_OK")
</pallas_src>

<mosaic_0001>
module attributes {stable_mosaic.version = 11 : i64} {
  func.func @gcn_kernel(%arg0: i32, %arg1: memref<1x128x128xbf16, #tpu.memory_space<vmem>>, %arg2: memref<1x128x8xbf16, #tpu.memory_space<vmem>>, %arg3: memref<1x8x128xf32, #tpu.memory_space<vmem>>, %arg4: memref<8x128xbf16, #tpu.memory_space<vmem>>, %arg5: memref<1x128xf32, #tpu.memory_space<vmem>>, %arg6: memref<128x128xbf16, #tpu.memory_space<vmem>>, %arg7: memref<1x128xf32, #tpu.memory_space<vmem>>, %arg8: memref<128x128xbf16, #tpu.memory_space<vmem>>, %arg9: memref<1x128xf32, #tpu.memory_space<vmem>>, %arg10: memref<128x128xbf16, #tpu.memory_space<vmem>>, %arg11: memref<1x128xf32, #tpu.memory_space<vmem>>, %arg12: memref<128x128xbf16, #tpu.memory_space<vmem>>, %arg13: memref<1x128xf32, #tpu.memory_space<vmem>>, %arg14: memref<1x8x128xf32, #tpu.memory_space<vmem>>) attributes {dimension_semantics = [#tpu.dimension_semantics<parallel>], iteration_bounds = array<i64: 4>, scalar_prefetch = 0 : i64, scratch_operands = 0 : i64, tpu.core_type = #tpu.core_type<tc>, window_params = [{transform_indices = @transform_0, window_bounds = array<i64: 1, 128, 128>}, {transform_indices = @transform_1, window_bounds = array<i64: 1, 128, 8>}, {transform_indices = @transform_2, window_bounds = array<i64: 1, 8, 128>}, {pipeline_mode = #tpu.pipeline_mode<synchronous>, transform_indices = @transform_3, window_bounds = array<i64: 8, 128>}, {pipeline_mode = #tpu.pipeline_mode<synchronous>, transform_indices = @transform_4, window_bounds = array<i64: 1, 128>}, {pipeline_mode = #tpu.pipeline_mode<synchronous>, transform_indices = @transform_5, window_bounds = array<i64: 128, 128>}, {pipeline_mode = #tpu.pipeline_mode<synchronous>, transform_indices = @transform_6, window_bounds = array<i64: 1, 128>}, {pipeline_mode = #tpu.pipeline_mode<synchronous>, transform_indices = @transform_7, window_bounds = array<i64: 128, 128>}, {pipeline_mode = #tpu.pipeline_mode<synchronous>, transform_indices = @transform_8, window_bounds = array<i64: 1, 128>}, {pipeline_mode = #tpu.pipeline_mode<synchronous>, transform_indices = @transform_9, window_bounds = array<i64: 128, 128>}, {pipeline_mode = #tpu.pipeline_mode<synchronous>, transform_indices = @transform_10, window_bounds = array<i64: 1, 128>}, {pipeline_mode = #tpu.pipeline_mode<synchronous>, transform_indices = @transform_11, window_bounds = array<i64: 128, 128>}, {pipeline_mode = #tpu.pipeline_mode<synchronous>, transform_indices = @transform_12, window_bounds = array<i64: 1, 128>}, {transform_indices = @transform_13, window_bounds = array<i64: 1, 8, 128>}]} {
    %c0 = arith.constant 0 : index
    %c0_0 = arith.constant 0 : index
    %c0_1 = arith.constant 0 : index
    %0 = vector.load %arg1[%c0, %c0_0, %c0_1] : memref<1x128x128xbf16, #tpu.memory_space<vmem>>, vector<1x128x128xbf16>
    %1 = vector.shape_cast %0 : vector<1x128x128xbf16> to vector<128x128xbf16>
    %c0_2 = arith.constant 0 : index
    %c0_3 = arith.constant 0 : index
    %c0_4 = arith.constant 0 : index
    %2 = vector.load %arg2[%c0_2, %c0_3, %c0_4] : memref<1x128x8xbf16, #tpu.memory_space<vmem>>, vector<1x128x8xbf16>
    %3 = vector.shape_cast %2 : vector<1x128x8xbf16> to vector<128x8xbf16>
    %c0_5 = arith.constant 0 : index
    %c0_6 = arith.constant 0 : index
    %4 = vector.load %arg4[%c0_5, %c0_6] : memref<8x128xbf16, #tpu.memory_space<vmem>>, vector<8x128xbf16>
    %cst = arith.constant dense<0.000000e+00> : vector<128x128xf32>
    %5 = tpu.matmul %3, %4, %cst {dimension_numbers = #tpu.dot_dimension_numbers<[1], [0], [0], [1], [0, 0, 1, 1], [], []>} : vector<128x8xbf16>, vector<8x128xbf16>, vector<128x128xf32> -> vector<128x128xf32>
    %6 = arith.truncf %5 : vector<128x128xf32> to vector<128x128xbf16>
    %cst_7 = arith.constant dense<0.000000e+00> : vector<128x128xf32>
    %7 = tpu.matmul %1, %6, %cst_7 {dimension_numbers = #tpu.dot_dimension_numbers<[1], [0], [0], [1], [0, 0, 1, 1], [], []>} : vector<128x128xbf16>, vector<128x128xbf16>, vector<128x128xf32> -> vector<128x128xf32>
    %c0_8 = arith.constant 0 : index
    %c0_9 = arith.constant 0 : index
    %8 = vector.load %arg5[%c0_8, %c0_9] : memref<1x128xf32, #tpu.memory_space<vmem>>, vector<1x128xf32>
    %9 = vector.broadcast %8 : vector<1x128xf32> to vector<128x128xf32>
    %10 = arith.addf %7, %9 : vector<128x128xf32>
    %cst_10 = arith.constant 0.000000e+00 : f32
    %11 = vector.broadcast %cst_10 : f32 to vector<128x128xf32>
    %12 = arith.maximumf %10, %11 : vector<128x128xf32>
    %13 = arith.truncf %12 : vector<128x128xf32> to vector<128x128xbf16>
    %c0_11 = arith.constant 0 : index
    %c0_12 = arith.constant 0 : index
    %14 = vector.load %arg6[%c0_11, %c0_12] : memref<128x128xbf16, #tpu.memory_space<vmem>>, vector<128x128xbf16>
    %cst_13 = arith.constant dense<0.000000e+00> : vector<128x128xf32>
    %15 = tpu.matmul %13, %14, %cst_13 {dimension_numbers = #tpu.dot_dimension_numbers<[1], [0], [0], [1], [0, 0, 1, 1], [], []>} : vector<128x128xbf16>, vector<128x128xbf16>, vector<128x128xf32> -> vector<128x128xf32>
    %16 = arith.truncf %15 : vector<128x128xf32> to vector<128x128xbf16>
    %cst_14 = arith.constant dense<0.000000e+00> : vector<128x128xf32>
    %17 = tpu.matmul %1, %16, %cst_14 {dimension_numbers = #tpu.dot_dimension_numbers<[1], [0], [0], [1], [0, 0, 1, 1], [], []>} : vector<128x128xbf16>, vector<128x128xbf16>, vector<128x128xf32> -> vector<128x128xf32>
    %c0_15 = arith.constant 0 : index
    %c0_16 = arith.constant 0 : index
    %18 = vector.load %arg7[%c0_15, %c0_16] : memref<1x128xf32, #tpu.memory_space<vmem>>, vector<1x128xf32>
    %19 = vector.broadcast %18 : vector<1x128xf32> to vector<128x128xf32>
    %20 = arith.addf %17, %19 : vector<128x128xf32>
    %cst_17 = arith.constant 0.000000e+00 : f32
    %21 = vector.broadcast %cst_17 : f32 to vector<128x128xf32>
    %22 = arith.maximumf %20, %21 : vector<128x128xf32>
    %23 = arith.truncf %22 : vector<128x128xf32> to vector<128x128xbf16>
    %c0_18 = arith.constant 0 : index
    %c0_19 = arith.constant 0 : index
    %24 = vector.load %arg8[%c0_18, %c0_19] : memref<128x128xbf16, #tpu.memory_space<vmem>>, vector<128x128xbf16>
    %cst_20 = arith.constant dense<0.000000e+00> : vector<128x128xf32>
    %25 = tpu.matmul %23, %24, %cst_20 {dimension_numbers = #tpu.dot_dimension_numbers<[1], [0], [0], [1], [0, 0, 1, 1], [], []>} : vector<128x128xbf16>, vector<128x128xbf16>, vector<128x128xf32> -> vector<128x128xf32>
    %26 = arith.truncf %25 : vector<128x128xf32> to vector<128x128xbf16>
    %cst_21 = arith.constant dense<0.000000e+00> : vector<128x128xf32>
    %27 = tpu.matmul %1, %26, %cst_21 {dimension_numbers = #tpu.dot_dimension_numbers<[1], [0], [0], [1], [0, 0, 1, 1], [], []>} : vector<128x128xbf16>, vector<128x128xbf16>, vector<128x128xf32> -> vector<128x128xf32>
    %c0_22 = arith.constant 0 : index
    %c0_23 = arith.constant 0 : index
    %28 = vector.load %arg9[%c0_22, %c0_23] : memref<1x128xf32, #tpu.memory_space<vmem>>, vector<1x128xf32>
    %29 = vector.broadcast %28 : vector<1x128xf32> to vector<128x128xf32>
    %30 = arith.addf %27, %29 : vector<128x128xf32>
    %cst_24 = arith.constant 0.000000e+00 : f32
    %31 = vector.broadcast %cst_24 : f32 to vector<128x128xf32>
    %32 = arith.maximumf %30, %31 : vector<128x128xf32>
    %33 = arith.truncf %32 : vector<128x128xf32> to vector<128x128xbf16>
    %c0_25 = arith.constant 0 : index
    %c0_26 = arith.constant 0 : index
    %34 = vector.load %arg10[%c0_25, %c0_26] : memref<128x128xbf16, #tpu.memory_space<vmem>>, vector<128x128xbf16>
    %cst_27 = arith.constant dense<0.000000e+00> : vector<128x128xf32>
    %35 = tpu.matmul %33, %34, %cst_27 {dimension_numbers = #tpu.dot_dimension_numbers<[1], [0], [0], [1], [0, 0, 1, 1], [], []>} : vector<128x128xbf16>, vector<128x128xbf16>, vector<128x128xf32> -> vector<128x128xf32>
    %36 = arith.truncf %35 : vector<128x128xf32> to vector<128x128xbf16>
    %cst_28 = arith.constant dense<0.000000e+00> : vector<128x128xf32>
    %37 = tpu.matmul %1, %36, %cst_28 {dimension_numbers = #tpu.dot_dimension_numbers<[1], [0], [0], [1], [0, 0, 1, 1], [], []>} : vector<128x128xbf16>, vector<128x128xbf16>, vector<128x128xf32> -> vector<128x128xf32>
    %c0_29 = arith.constant 0 : index
    %c0_30 = arith.constant 0 : index
    %38 = vector.load %arg11[%c0_29, %c0_30] : memref<1x128xf32, #tpu.memory_space<vmem>>, vector<1x128xf32>
    %39 = vector.broadcast %38 : vector<1x128xf32> to vector<128x128xf32>
    %40 = arith.addf %37, %39 : vector<128x128xf32>
    %c0_31 = arith.constant 0 : index
    %c0_32 = arith.constant 0 : index
    %c0_33 = arith.constant 0 : index
    %41 = vector.load %arg3[%c0_31, %c0_32, %c0_33] : memref<1x8x128xf32, #tpu.memory_space<vmem>>, vector<1x8x128xf32>
    %42 = vector.shape_cast %41 : vector<1x8x128xf32> to vector<8x128xf32>
    %43 = vector.shape_cast %40 : vector<128x128xf32> to vector<1x128x128xf32>
    %44 = vector.shape_cast %42 : vector<8x128xf32> to vector<8x128x1xf32>
    %45 = vector.broadcast %43 : vector<1x128x128xf32> to vector<8x128x128xf32>
    %46 = vector.broadcast %44 : vector<8x128x1xf32> to vector<8x128x128xf32>
    %47 = arith.addf %45, %46 : vector<8x128x128xf32>
    %cst_34 = arith.constant dense<0xFF800000> : vector<8x128xf32>
    %48 = vector.multi_reduction <maximumf>, %47, %cst_34 [1] : vector<8x128x128xf32> to vector<8x128xf32>
    %49 = arith.truncf %48 : vector<8x128xf32> to vector<8x128xbf16>
    %c0_35 = arith.constant 0 : index
    %c0_36 = arith.constant 0 : index
    %50 = vector.load %arg12[%c0_35, %c0_36] : memref<128x128xbf16, #tpu.memory_space<vmem>>, vector<128x128xbf16>
    %cst_37 = arith.constant dense<0.000000e+00> : vector<8x128xf32>
    %51 = tpu.matmul %49, %50, %cst_37 {dimension_numbers = #tpu.dot_dimension_numbers<[1], [0], [0], [1], [0, 0, 1, 1], [], []>} : vector<8x128xbf16>, vector<128x128xbf16>, vector<8x128xf32> -> vector<8x128xf32>
    %c0_38 = arith.constant 0 : index
    %c0_39 = arith.constant 0 : index
    %52 = vector.load %arg13[%c0_38, %c0_39] : memref<1x128xf32, #tpu.memory_space<vmem>>, vector<1x128xf32>
    %53 = vector.broadcast %52 : vector<1x128xf32> to vector<8x128xf32>
    %54 = arith.addf %51, %53 : vector<8x128xf32>
    %c0_40 = arith.constant 0 : index
    %c0_41 = arith.constant 0 : index
    %c0_42 = arith.constant 0 : index
    %55 = vector.load %arg14[%c0_40, %c0_41, %c0_42] : memref<1x8x128xf32, #tpu.memory_space<vmem>>, vector<1x8x128xf32>
    %56 = vector.shape_cast %55 : vector<1x8x128xf32> to vector<8x128xf32>
    %57 = vector.shape_cast %54 : vector<8x128xf32> to vector<1x8x128xf32>
    tpu.vector_store %arg14[%c0_40, %c0_41, %c0_42], %57 {strides = array<i32>} : memref<1x8x128xf32, #tpu.memory_space<vmem>>, vector<1x8x128xf32>,
    return
  }
  func.func @transform_0(%arg0: i32) -> (i32, i32, i32) {
    %c0_i32 = arith.constant 0 : i32
    %c0_i32_0 = arith.constant 0 : i32
    %c0_i32_1 = arith.constant 0 : i32
    return %arg0, %c0_i32, %c0_i32_0 : i32, i32, i32
  }
  func.func @transform_1(%arg0: i32) -> (i32, i32, i32) {
    %c0_i32 = arith.constant 0 : i32
    %c0_i32_0 = arith.constant 0 : i32
    %c0_i32_1 = arith.constant 0 : i32
    return %arg0, %c0_i32, %c0_i32_0 : i32, i32, i32
  }
  func.func @transform_2(%arg0: i32) -> (i32, i32, i32) {
    %c0_i32 = arith.constant 0 : i32
    %c0_i32_0 = arith.constant 0 : i32
    %c0_i32_1 = arith.constant 0 : i32
    return %arg0, %c0_i32, %c0_i32_0 : i32, i32, i32
  }
  func.func @transform_3(%arg0: i32) -> (i32, i32) {
    %c0_i32 = arith.constant 0 : i32
    %c0_i32_0 = arith.constant 0 : i32
    %c0_i32_1 = arith.constant 0 : i32
    return %c0_i32, %c0_i32_0 : i32, i32
  }
  func.func @transform_4(%arg0: i32) -> (i32, i32) {
    %c0_i32 = arith.constant 0 : i32
    %c0_i32_0 = arith.constant 0 : i32
    %c0_i32_1 = arith.constant 0 : i32
    return %c0_i32, %c0_i32_0 : i32, i32
  }
  func.func @transform_5(%arg0: i32) -> (i32, i32) {
    %c0_i32 = arith.constant 0 : i32
    %c0_i32_0 = arith.constant 0 : i32
    %c0_i32_1 = arith.constant 0 : i32
    return %c0_i32, %c0_i32_0 : i32, i32
  }
  func.func @transform_6(%arg0: i32) -> (i32, i32) {
    %c0_i32 = arith.constant 0 : i32
    %c0_i32_0 = arith.constant 0 : i32
    %c0_i32_1 = arith.constant 0 : i32
    return %c0_i32, %c0_i32_0 : i32, i32
  }
  func.func @transform_7(%arg0: i32) -> (i32, i32) {
    %c0_i32 = arith.constant 0 : i32
    %c0_i32_0 = arith.constant 0 : i32
    %c0_i32_1 = arith.constant 0 : i32
    return %c0_i32, %c0_i32_0 : i32, i32
  }
  func.func @transform_8(%arg0: i32) -> (i32, i32) {
    %c0_i32 = arith.constant 0 : i32
    %c0_i32_0 = arith.constant 0 : i32
    %c0_i32_1 = arith.constant 0 : i32
    return %c0_i32, %c0_i32_0 : i32, i32
  }
  func.func @transform_9(%arg0: i32) -> (i32, i32) {
    %c0_i32 = arith.constant 0 : i32
    %c0_i32_0 = arith.constant 0 : i32
    %c0_i32_1 = arith.constant 0 : i32
    return %c0_i32, %c0_i32_0 : i32, i32
  }
  func.func @transform_10(%arg0: i32) -> (i32, i32) {
    %c0_i32 = arith.constant 0 : i32
    %c0_i32_0 = arith.constant 0 : i32
    %c0_i32_1 = arith.constant 0 : i32
    return %c0_i32, %c0_i32_0 : i32, i32
  }
  func.func @transform_11(%arg0: i32) -> (i32, i32) {
    %c0_i32 = arith.constant 0 : i32
    %c0_i32_0 = arith.constant 0 : i32
    %c0_i32_1 = arith.constant 0 : i32
    return %c0_i32, %c0_i32_0 : i32, i32
  }
  func.func @transform_12(%arg0: i32) -> (i32, i32) {
    %c0_i32 = arith.constant 0 : i32
    %c0_i32_0 = arith.constant 0 : i32
    %c0_i32_1 = arith.constant 0 : i32
    return %c0_i32, %c0_i32_0 : i32, i32
  }
  func.func @transform_13(%arg0: i32) -> (i32, i32, i32) {
    %c0_i32 = arith.constant 0 : i32
    %c0_i32_0 = arith.constant 0 : i32
    %c0_i32_1 = arith.constant 0 : i32
    return %arg0, %c0_i32, %c0_i32_0 : i32, i32, i32
  }
}

</mosaic_0001>

<bundles_post_ra>
// kernel: tpu_custom_call.1
= control target key start
LH: loop header
LB: loop body
LE: loop exit
PB: predicated region body
PF: predicated region fallthrough
CT: control target
= control target key end

     0   :  { %s4868_s0 = inlined_call_operand.vmem [shape: bf16[4,128,128], index: 0, kind: input, shape index: {}]   ;;  %s4869_s1 = inlined_call_operand.vmem [shape: bf16[4,128,8], index: 1, kind: input, shape index: {}]   ;;  %s4870_s2 = inlined_call_operand.hbm [shape: f32[4,8,128], index: 2, kind: input, shape index: {}]   ;;  %s4871_s3 = inlined_call_operand.vmem [shape: bf16[8,128], index: 3, kind: input, shape index: {}]   ;;  %s4872_s4 = inlined_call_operand.vmem [shape: f32[1,128], index: 4, kind: input, shape index: {}]   ;;  %s4873_s5 = inlined_call_operand.hbm [shape: bf16[128,128], index: 5, kind: input, shape index: {}]   ;;  %s4874_s6 = inlined_call_operand.vmem [shape: f32[1,128], index: 6, kind: input, shape index: {}]   ;;  %s4875_s7 = inlined_call_operand.hbm [shape: bf16[128,128], index: 7, kind: input, shape index: {}]   ;;  %s4876_s8 = inlined_call_operand.vmem [shape: f32[1,128], index: 8, kind: input, shape index: {}]   ;;  %s4877_s9 = inlined_call_operand.hbm [shape: bf16[128,128], index: 9, kind: input, shape index: {}]   ;;  %s4878_s10 = inlined_call_operand.vmem [shape: f32[1,128], index: 10, kind: input, shape index: {}]   ;;  %s4879_s11 = inlined_call_operand.hbm [shape: bf16[128,128], index: 11, kind: input, shape index: {}]   ;;  %s4880_s12 = inlined_call_operand.vmem [shape: f32[1,128], index: 12, kind: input, shape index: {}]   ;;  %s4881_s13 = inlined_call_operand.hbm [shape: f32[4,8,128], index: 13, kind: output, shape index: {}]  }
   0x1   :  { %4892 = sst [smem:[#allocation94_spill]] %s4873_s5 }
   0x2   :  { %4893 = sst [smem:[#allocation95_spill]] %s4875_s7 }
   0x3   :  { %4894 = sst [smem:[#allocation96_spill]] %s4877_s9 }
   0x4   :  { %4895 = sst [smem:[#allocation97_spill]] %s4879_s11 }
   0x5   :  { %18 = vsyncpa [#allocation3], 0 }
   0x6   :  { %20 = vsyncpa [#allocation3 + $0x1], 0 }
   0x7   :  { %21 = vsyncpa [#allocation6], 0 }
   0x8   :  { %22 = vsyncpa [#allocation9], 0 }
   0x9   :  { %23 = vsyncpa [#allocation4], 0 }
   0xa   :  { %25 = vsyncpa [#allocation4 + $0x1], 0  ;;  %s3848_s25 = smov 0   ;;  %s3850_s26 = smov 0  }
   0xb   :  { %s3852_s27 = smov 0   ;;  %s3854_s28 = smov 0  }
   0xc LB: > { %4896 = sst [smem:[#allocation16_spill]] %s3762_s27  ;;  %s3768_s29 = smov [#allocation5]   ;;  %s3766_s28 = sphi %s3854_s28, %s5070_s28   ;;  %s3762_s27 = sphi %s3852_s27, %s5072_s27   ;;  %s3758_s26 = sphi %s3850_s26, %s5074_s26   ;;  %s3754_s25 = sphi %s3848_s25, %s5073_s25  }
   0xd   : > { %s368_s30 = sshll.u32 %s3768_s29, 4  ;;  %s3869_s14 = sadd.s32 4294967295, %s3766_s28   ;;  %s369_s30 = int_to_ptr.vmem [resolvable:$true] %s368_s30 }
   0xe   : > { %p2937_p0 = scmp.ge.s32.totalorder %s3766_s28, 1  ;;  %p4883_p1 = scmp.eq.s32.totalorder %s3869_s14, 0 }
   0xf   : > { %p350_p2 = scmp.lt.s32.totalorder %s3766_s28, 5  ;;  %s3769_s16 = smov [#allocation8]  }
  0x10   : > { %s400_s17 = sshll.u32 %s3769_s16, 4  ;;  %s3770_s19 = smov [#allocation7]   ;;  %s3886_s17 = int_to_ptr.vmem [resolvable:$true] %s400_s17 }
  0x11   : > { %p3874_p3 = pnand %p2937_p0, %p350_p2  ;;  %s384_s20 = sshll.u32 %s3770_s19, 4  ;;  %s3888_s20 = int_to_ptr.vmem [resolvable:$true] %s384_s20 }
  0x12   : > { %s3573_s21 = scalar_lea.vmem %s369_s30, 1024  ;;  %p3581_p10 = scmp.lt.s32.totalorder %s369_s30, %s369_s30 }
  0x13   : > { %s4897_s15 = scalar_select %p3874_p3, 1, 0 }
  0x14   : > { %p3436_p4 = pneg %p3874_p3  ;;  %p3574_p7 = scmp.ne.s32.totalorder %s369_s30, %s3573_s21 }
  0x15   : > { %p3582_p11 = scmp.lt.s32.totalorder %s3573_s21, %s3573_s21 }
  0x16   : > { %p3882_p5 = pnand %p3436_p4, %p4883_p1 }
  0x17   : > { %p3583_p12 = por %p3582_p11, %p3581_p10 }
  0x18   : > { %p3564_p6 = pneg %p3882_p5 }
  0x1a   : > { %p3576_p8 = pnand %p3574_p7, %p3564_p6 }
  0x1c   : > { %p3577_p9 = pneg %p3576_p8 }
  0x1e   : > { %p3584_p13 = pnand %p3583_p12, %p3577_p9 }
  0x20   : > { %3587 = shalt.err (!%p3584_p13)
}
  0x21   : > { %s3771_s22 = smov 64   ;;  %s3772_s23 = smov 4  }
  0x22   : > { %s4899_s5 = sld [smem:[#allocation94_spill]]  ;;  %s3599_s16 = scalar_lea.vmem %s3886_s17, 1024 }
  0x23   : > { %p3600_p0 = scmp.ne.s32.totalorder %s3886_s17, %s3599_s16  ;;  %p3607_p7 = scmp.lt.s32.totalorder %s3886_s17, %s3886_s17 }
  0x24   : > { %p3608_p8 = scmp.lt.s32.totalorder %s3599_s16, %s3599_s16 }
  0x25   : > { %p3602_p2 = pnand %p3600_p0, %p3564_p6 }
  0x26   : > { %p3609_p9 = por %p3608_p8, %p3607_p7 }
  0x27   : > { %p3603_p4 = pneg %p3602_p2 }
  0x28   : > { %3439 = dma.hbm_to_vmem [thread:$0]  (!%p3882_p5), %s4899_s5, 1024, %s369_s30, [#allocation6], %s3771_s22, %s3771_s22, %s3772_s23  }
  0x29   : > { %p3610_p10 = pnand %p3609_p9, %p3603_p4 }
  0x2b   : > { %3613 = shalt.err (!%p3610_p10)
}
  0x2c   : > { %s4900_s9 = sld [smem:[#allocation96_spill]]  ;;  %s3625_s21 = scalar_lea.vmem %s3888_s20, 1024 }
  0x2d   : > { %p3626_p11 = scmp.ne.s32.totalorder %s3888_s20, %s3625_s21  ;;  %p3633_p0 = scmp.lt.s32.totalorder %s3888_s20, %s3888_s20 }
  0x2e   : > { %p3634_p2 = scmp.lt.s32.totalorder %s3625_s21, %s3625_s21 }
  0x2f   : > { %p3628_p12 = pnand %p3626_p11, %p3564_p6 }
  0x30   : > { %p3635_p4 = por %p3634_p2, %p3633_p0 }
  0x31   : > { %p3629_p13 = pneg %p3628_p12 }
  0x32   : > { %3445 = dma.hbm_to_vmem [thread:$0]  (!%p3882_p5), %s4900_s9, 1024, %s3886_s17, [#allocation9], %s3771_s22, %s3771_s22, %s3772_s23  }
  0x33   : > { %p3636_p7 = pnand %p3635_p4, %p3629_p13 }
  0x35   : > { %3639 = shalt.err (!%p3636_p7)
}
  0x36   : > { %s4901_s7 = sld [smem:[#allocation95_spill]]  ;;  %s3773_s29 = smov [#allocation10]  }
  0x37   : > { %s416_s16 = sshll.u32 %s3773_s29, 4  ;;  %s417_s16 = int_to_ptr.vmem [resolvable:$true] %s416_s16 }
  0x38   : > { %s3651_s19 = scalar_lea.vmem %s417_s16, 1024  ;;  %p3659_p11 = scmp.lt.s32.totalorder %s417_s16, %s417_s16 }
  0x39   : > { %p3652_p8 = scmp.ne.s32.totalorder %s417_s16, %s3651_s19  ;;  %p3660_p12 = scmp.lt.s32.totalorder %s3651_s19, %s3651_s19 }
  0x3b   : > { %p3654_p9 = pnand %p3652_p8, %p3564_p6  ;;  %p3661_p13 = por %p3660_p12, %p3659_p11 }
  0x3c   : > { %3442 = dma.hbm_to_vmem [thread:$0]  (!%p3882_p5), %s4901_s7, 1024, %s3888_s20, [#allocation6], %s3771_s22, %s3771_s22, %s3772_s23  }
  0x3d   : > { %p3655_p10 = pneg %p3654_p9 }
  0x3f   : > { %p3662_p0 = pnand %p3661_p13, %p3655_p10 }
  0x41   : > { %3665 = shalt.err (!%p3662_p0)
}
  0x42   : > { %s4902_s11 = sld [smem:[#allocation97_spill]]  ;;  %s2936_s18 = sadd.s32 4294967294, %s3766_s28  }
  0x43   : > { %s3948_s21 = sadd.s32 1, %s3766_s28   ;;  %s90_s17 = sadd.s32 1, %s3762_s27 }
  0x44   : > { %4903 = sst [smem:[#allocation17_spill]] %s3948_s21  ;;  %s87_s24 = ssub.s32 %s3766_s28, %s3948_s21 }
  0x45   : > { %p88_p6 = scmp.eq.s32.totalorder %s87_s24, 0  ;;  %p97_p2 = scmp.ne.s32.totalorder %s3762_s27, %s3758_s26 }
  0x46   : > { %p98_p4 = scmp.eq.s32.totalorder %s3766_s28, 0  ;;  %p103_p7 = scmp.ne.s32.totalorder %s3758_s26, %s3754_s25 }
  0x47   : > { %s3959_s29 = scalar_select %p88_p6, %s3762_s27, %s90_s17  }
  0x48   : > { %3448 = dma.hbm_to_vmem [thread:$0]  (!%p3882_p5), %s4902_s11, 1024, %s417_s16, [#allocation9], %s3771_s22, %s3771_s22, %s3772_s23  }
  0x49   : > { %4904 = sst [smem:[#allocation18_spill]] %s3959_s29  ;;  %p3961_p8 = por %p98_p4, %p97_p2 }
  0x4a   : > { %p3967_p5 = por %p4883_p1, %p103_p7  ;;  %p337_p9 = scmp.eq.s32.totalorder %s3869_s14, 3 }
  0x4b   : > { %p343_p10 = scmp.eq.s32.totalorder %s2936_s18, 3  ;;  %p3461_p11 = scmp.lt.s32.totalorder %s3766_s28, 4 }
  0x4c   : > { %s4906_s22 = scalar_select %p3967_p5, 1, 0 }
  0x4d   : > { %s449_s23 = sand.u32 1, %s3762_s27   ;;  %p3974_p12 = por %p337_p9, %p97_p2 }
  0x4e   : > { %p3978_p13 = por %p343_p10, %p103_p7  ;;  %s2943_s30 = sshll.u32 %s449_s23, 3 }
  0x4f   : > { %s4907_s16 = scalar_select %p3974_p12, 1, 0 }
  0x50   : > { %s4908_s20 = scalar_select %p3978_p13, 1, 0 }
  0x51   : > { %s2944_s24 = sshll.u32 %s3766_s28, 7  ;;  %s453_s18 = scalar_lea.vmem [#allocation2], %s2943_s30 }
  0x52   : > { %4909 = sst [smem:[#allocation19_spill]] %s4908_s20  ;;  %s3986_s7 = scalar_lea.hbm %s4870_s2, %s2944_s24 }
  0x53   : > { %s460_s9 = sshll.u32 %s453_s18, 4  ;;  %p3990_p0 = pnand %p3461_p11, %p3961_p8  ;;  %s461_s9 = int_to_ptr.vmem [resolvable:$true] %s460_s9 }
  0x54   : > { %s450_s29 = scalar_lea.sflag [#allocation3], %s449_s23  ;;  %s3666_s27 = scalar_lea.hbm %s3986_s7, 128 }
  0x55   : > { %p3667_p6 = scmp.ne.s32.totalorder %s3986_s7, %s3666_s27  ;;  %p3668_p2 = pneg %p3990_p0 }
  0x56   : > { %s3671_s17 = scalar_lea.hbm %s4870_s2, 512  ;;  %p3672_p9 = scmp.lt.s32.totalorder %s3986_s7, %s4870_s2 }
  0x57   : > { %p3669_p4 = pnand %p3668_p2, %p3667_p6  ;;  %p3673_p8 = scmp.lt.s32.totalorder %s3671_s17, %s3666_s27 }
  0x59   : > { %p3670_p7 = pneg %p3669_p4  ;;  %p3674_p10 = por %p3673_p8, %p3672_p9 }
  0x5b   : > { %p3675_p11 = pnand %p3674_p10, %p3670_p7 }
  0x5d   : > { %3678 = shalt.err (!%p3675_p11)
}
  0x5e   : > { %s3679_s19 = scalar_lea.vmem %s461_s9, 128  ;;  %s3774_s23 = smov [#allocation2]  }
  0x5f   : > { %p3680_p1 = scmp.ne.s32.totalorder %s461_s9, %s3679_s19  ;;  %s3684_s21 = sshll.u32 %s3774_s23, 4  ;;  %s3685_s21 = int_to_ptr.vmem [resolvable:$false] %s3684_s21 }
  0x60   : > { %s3686_s20 = scalar_lea.vmem %s3685_s21, 256  ;;  %p3687_p6 = scmp.lt.s32.totalorder %s461_s9, %s3685_s21 }
  0x61   : > { %p3682_p13 = pnand %p3680_p1, %p3668_p2  ;;  %p3688_p4 = scmp.lt.s32.totalorder %s3686_s20, %s3679_s19 }
  0x63   : > { %p3683_p12 = pneg %p3682_p13  ;;  %p3689_p5 = por %p3688_p4, %p3687_p6 }
  0x65   : > { %p3690_p3 = pnand %p3689_p5, %p3683_p12 }
  0x67   : > { %3693 = shalt.err (!%p3690_p3)
}
  0x68   : > { %3452 = dma.hbm_to_vmem [thread:$0]  (!%p3990_p0), %s3986_s7, 128, %s461_s9, %s450_s29  }
  0x69   : > { %p4911_p7 = scmp.ne.s32.totalorder %s4897_s15, 0 }
  0x6b   : > { %469 = sbr.rel (%p4911_p7) target bundleno = 2267 (0x8db), region = 72 }
  0x70   : > { %s4011_s27 = sand.u32 1, %s3758_s26   ;;  %p4912_p1 = scmp.ne.s32.totalorder %s4906_s22, 0 }
  0x71   : > { %s2946_s5 = sshll.u32 %s4011_s27, 3  ;;  %s472_s21 = scalar_lea.sflag [#allocation3], %s4011_s27 }
  0x72   : > { %s4017_s20 = scalar_lea.vmem [#allocation2], %s2946_s5 }
  0x73   : > { %3737 = dma.done.wait (%p4912_p1), %s472_s21, 128  }
  0x74   : > { %3739 = vsyncadd (%p4912_p1), %s472_s21, 4294967168  ;;  %p4913_p3 = scmp.eq.s32.totalorder %s3869_s14, 0 }
  0x76   : > { %3741 = dma.done.wait (%p4913_p3), [#allocation6], 2048   ;;  %p4914_p5 = pmov %p4913_p3 }
  0x77   : > { %p4915_p12 = pmov %p4913_p3 }
  0x78   : > { %3743 = vsyncadd (%p4914_p5), [#allocation6], 4294965248 }
  0x79   : > { %3745 = dma.done.wait (%p4915_p12), [#allocation9], 2048   ;;  %p4916_p13 = pmov %p4913_p3 }
  0x7a   : > { %p544_p0 = scmp.lt.s32.totalorder %s3869_s14, 3  ;;  %vm653_vm0 = vcmask 1043456   ;;  %vm628_vm1 = vcmask 64512   ;;  %v587_v0 = vld [vmem:[%s4871_s3] sm:$0xf]  ;;  %v3523_v11 = vld [vmem:[#allocation5 + $0x38] sm:$0xff]  }
  0x7b   : > { %3747 = vsyncadd (%p4916_p13), [#allocation9], 4294965248  ;;  %3415 = vmatprep.subr.msk.bf16.mxu0 %vm653_vm0, %v587_v0  ;;  %v655_v1 = vsel %vm653_vm0, %v587_v0, 0  ;;  %v3524_v12 = vld [vmem:[#allocation5 + $0x30] sm:$0xff]   ;;  %v3525_v13 = vld [vmem:[#allocation5 + $0x28] sm:$0xff]   ;;  %vm3776_vm2 = vmmov 0  }
  0x7c   : > { %s545_s7 = scalar_select %p544_p0, %s3869_s14, 3  ;;  %3154 = vmatpush3.bf16.msra.mxu0 %v655_v1  ;;  %v3526_v14 = vld [vmem:[#allocation5 + $0x20] sm:$0xff]   ;;  %v3527_v15 = vld [vmem:[#allocation5 + $0x18] sm:$0xff]   ;;  %v3528_v47 = vld [vmem:[#allocation5 + $0x10] sm:$0xff]   ;;  %vm2685_vm3 = vcmask 1041409   ;;  %vm2687_vm4 = vcmask 1042434  }
  0x7d   : > { %3203 = vmatprep.subr.bf16.mxu0 %v3523_v11  ;;  %v3529_v48 = vld [vmem:[#allocation5 + $0x8] sm:$0xff]   ;;  %v3530_v49 = vld [vmem:[#allocation5] sm:$0xff]   ;;  %v2972_v52 = vld [vmem:[%s4872_s4] ss:$0 sm:$0xff]  ;;  %vm2689_vm5 = vcmask 1043459   ;;  %vm2691_vm6 = vcmask 1044484  }
  0x7e   : > { %s3021_s9 = sshll.u32 %s545_s7, 6  ;;  %vm2693_vm7 = vcmask 1045509   ;;  %vm2695_vm8 = vcmask 1046534   ;;  %vm2697_vm9 = vcmask 1047559   ;;  %s3018_s24 = sshll.u32 %s3869_s14, 7 }
  0x7f   : > { %s553_s29 = scalar_lea.vmem %s4869_s1, %s3021_s9  ;;  %s4045_s18 = scalar_lea.vmem %s4868_s0, %s3021_s9 }
  0x80   : > { %v3507_v2 = vld [vmem:[%s553_s29] sm:$0xff]   ;;  %v3508_v3 = vld [vmem:[%s553_s29 + $0x8] sm:$0xff]   ;;  %v3509_v4 = vld [vmem:[%s553_s29 + $0x10] sm:$0xff]   ;;  %s543_s17 = scalar_lea.vmem [#allocation11], %s2946_s5  ;;  %s4826_s23 = scalar_lea.hbm %s4881_s13, %s3018_s24 }
  0x81   : > { %3155 = vmatprep.mubr.msk.bf16.mxu0 %vm628_vm1, %v3507_v2  ;;  %v3510_v5 = vld [vmem:[%s553_s29 + $0x18] sm:$0xff]   ;;  %v3511_v6 = vld [vmem:[%s553_s29 + $0x20] sm:$0xff]   ;;  %v3512_v7 = vld [vmem:[%s553_s29 + $0x28] sm:$0xff]   ;;  %s2804_s30 = sshll.u32 %s543_s17, 4  ;;  %s2791_s21 = scalar_lea.sflag [#allocation4], %s4011_s27  ;;  %s4828_s30 = int_to_ptr.vmem [resolvable:$true] %s2804_s30 }
  0x82   : > { %3156 = vmatmul.mubr.msk.bf16.vlgmr.msra.gmra.mxu0 %vm628_vm1, %v3508_v3  ;;  %v3513_v8 = vld [vmem:[%s553_s29 + $0x30] sm:$0xff]   ;;  %v3514_v9 = vld [vmem:[%s553_s29 + $0x38] sm:$0xff]   ;;  %v4053_v10 = vld [vmem:[%s4045_s18] sm:$0xff]   ;;  %s3694_s14 = scalar_lea.vmem %s4828_s30, 128  ;;  %p5067_p9 = scmp.ne.s32.totalorder %s4907_s16, 0 }
  0x83   : > { %3159 = vmatprep.mubr.msk.bf16.mxu0 %vm628_vm1, %v3509_v4  ;;  %3187 = vmatprep.mubr.bf16.mxu1 %v4053_v10  ;;  %v4057_v40 = vld [vmem:[%s4045_s18 + $0x8] sm:$0xff]   ;;  %v4060_v41 = vld [vmem:[%s4045_s18 + $0x10] sm:$0xff]   ;;  %v4065_v42 = vld [vmem:[%s4045_s18 + $0x18] sm:$0xff]   ;;  %p3695_p2 = scmp.ne.s32.totalorder %s4828_s30, %s3694_s14  ;;  %s3777_s5 = smov [#allocation11]  }
  0x84   : > { %3204 = vmatpush3.bf16.msra.mxu0 %v3523_v11  ;;  %v4068_v43 = vld [vmem:[%s4045_s18 + $0x20] sm:$0xff]   ;;  %v4073_v44 = vld [vmem:[%s4045_s18 + $0x28] sm:$0xff]   ;;  %v4076_v45 = vld [vmem:[%s4045_s18 + $0x30] sm:$0xff]   ;;  %s3698_s7 = sshll.u32 %s3777_s5, 4  ;;  %s3699_s7 = int_to_ptr.vmem [resolvable:$false] %s3698_s7 }
  0x85   : > { %3205 = vmatprep.subr.bf16.mxu0 %v3524_v12  ;;  %v4081_v46 = vld [vmem:[%s4045_s18 + $0x38] sm:$0xff]   ;;  %p3696_p8 = pnand %p3695_p2, %p5067_p9  ;;  %p3701_p11 = scmp.lt.s32.totalorder %s4828_s30, %s3699_s7 }
  0x87   : > { %p3697_p10 = pneg %p3696_p8 }
  0x88   : > { %3206 = vmatpush3.bf16.msra.mxu0 %v3524_v12 }
  0x89   : > { %3207 = vmatprep.subr.bf16.mxu0 %v3525_v13 }
  0x8a   : > { %3160 = vmatmul.mubr.msk.bf16.gmra.mxu0 %vm628_vm1, %v3510_v5 }
  0x8b   : > { %3163 = vmatprep.mubr.msk.bf16.mxu0 %vm628_vm1, %v3511_v6 }
  0x8c   : > { %3208 = vmatpush3.bf16.msra.mxu0 %v3525_v13 }
  0x8d   : > { %3209 = vmatprep.subr.bf16.mxu0 %v3526_v14 }
  0x90   : > { %3210 = vmatpush3.bf16.msra.mxu0 %v3526_v14 }
  0x91   : > { %3211 = vmatprep.subr.bf16.mxu0 %v3527_v15 }
  0x92   : > { %3164 = vmatmul.mubr.msk.bf16.gmra.mxu0 %vm628_vm1, %v3512_v7 }
  0x93   : > { %3167 = vmatprep.mubr.msk.bf16.mxu0 %vm628_vm1, %v3513_v8 }
  0x94   : > { %3212 = vmatpush3.bf16.msra.mxu0 %v3527_v15 }
  0x95   : > { %3213 = vmatprep.subr.bf16.mxu0 %v3528_v47 }
  0x98   : > { %3214 = vmatpush3.bf16.msra.mxu0 %v3528_v47 }
  0x99   : > { %3215 = vmatprep.subr.bf16.mxu0 %v3529_v48 }
  0x9a   : > { %3168 = vmatmul.mubr.msk.bf16.gmra.mxu0 %vm628_vm1, %v3514_v9 }
  0x9c   : > { %3216 = vmatpush3.bf16.msra.mxu0 %v3529_v48 }
  0x9d   : > { %3217 = vmatprep.subr.bf16.mxu0 %v3530_v49 }
  0xa0   : > { %3218 = vmatpush3.bf16.msra.mxu0 %v3530_v49 }
 0x142   : > { %v3157_v16 = vpop.f32.mrf.mxu0 }
 0x144   : > { %v691_v17 = vpop.f32.mrf.mxu0 }
 0x146   : > { %v3158_v18 = vpop.f32.mrf.mxu0 }
 0x147   : > { %v755_v38 = vpack.c.bf16 %v3158_v18, %v3157_v16 }
 0x148   : > { %v694_v19 = vpop.f32.mrf.mxu0 }
 0x149   : > { %v754_v39 = vpack.c.bf16 %v694_v19, %v691_v17 }
 0x14a   : > { %v3161_v20 = vpop.f32.mrf.mxu0 }
 0x14c   : > { %v707_v21 = vpop.f32.mrf.mxu0 }
 0x14e   : > { %v3162_v22 = vpop.f32.mrf.mxu0 }
 0x14f   : > { %v757_v36 = vpack.c.bf16 %v3162_v22, %v3161_v20 }
 0x150   : > { %v710_v23 = vpop.f32.mrf.mxu0 }
 0x151   : > { %v756_v37 = vpack.c.bf16 %v710_v23, %v707_v21 }
 0x152   : > { %v3165_v24 = vpop.f32.mrf.mxu0 }
 0x154   : > { %v723_v25 = vpop.f32.mrf.mxu0 }
 0x156   : > { %v3166_v26 = vpop.f32.mrf.mxu0 }
 0x157   : > { %v759_v34 = vpack.c.bf16 %v3166_v26, %v3165_v24 }
 0x158   : > { %v726_v27 = vpop.f32.mrf.mxu0 }
 0x159   : > { %v758_v35 = vpack.c.bf16 %v726_v27, %v723_v25 }
 0x15a   : > { %v3169_v28 = vpop.f32.mrf.mxu0 }
 0x15c   : > { %v739_v29 = vpop.f32.mrf.mxu0 }
 0x15e   : > { %v3170_v30 = vpop.f32.mrf.mxu0 }
 0x15f   : > { %v761_v31 = vpack.c.bf16 %v3170_v30, %v3169_v28 }
 0x160   : > { %v742_v32 = vpop.f32.mrf.mxu0 }
 0x161   : > { %v760_v33 = vpack.c.bf16 %v742_v32, %v739_v29  ;;  %3171 = vmatprep.subr.bf16.mxu1 %v761_v31 }
 0x162   : > { %3172 = vmatpush3.bf16.msra.mxu1 %v761_v31 }
 0x163   : > { %3173 = vmatprep.subr.bf16.mxu1 %v760_v33 }
 0x166   : > { %3174 = vmatpush3.bf16.msra.mxu1 %v760_v33 }
 0x167   : > { %3175 = vmatprep.subr.bf16.mxu1 %v759_v34 }
 0x16a   : > { %3176 = vmatpush3.bf16.msra.mxu1 %v759_v34 }
 0x16b   : > { %3177 = vmatprep.subr.bf16.mxu1 %v758_v35 }
 0x16e   : > { %3178 = vmatpush3.bf16.msra.mxu1 %v758_v35 }
 0x16f   : > { %3179 = vmatprep.subr.bf16.mxu1 %v757_v36 }
 0x172   : > { %3180 = vmatpush3.bf16.msra.mxu1 %v757_v36 }
 0x173   : > { %3181 = vmatprep.subr.bf16.mxu1 %v756_v37 }
 0x176   : > { %3182 = vmatpush3.bf16.msra.mxu1 %v756_v37 }
 0x177   : > { %3183 = vmatprep.subr.bf16.mxu1 %v755_v38 }
 0x17a   : > { %3184 = vmatpush3.bf16.msra.mxu1 %v755_v38 }
 0x17b   : > { %3185 = vmatprep.subr.bf16.mxu1 %v754_v39 }
 0x17e   : > { %3186 = vmatpush3.bf16.msra.mxu1 %v754_v39 }
 0x181   : > { %3188 = vmatmul.mubr.bf16.vlgmr.msra.gmra.mxu1 %v4057_v40 }
 0x182   : > { %3191 = vmatprep.mubr.bf16.mxu1 %v4060_v41 }
 0x189   : > { %3192 = vmatmul.mubr.bf16.gmra.mxu1 %v4065_v42 }
 0x18a   : > { %3195 = vmatprep.mubr.bf16.mxu1 %v4068_v43 }
 0x191   : > { %3196 = vmatmul.mubr.bf16.gmra.mxu1 %v4073_v44 }
 0x192   : > { %3199 = vmatprep.mubr.bf16.mxu1 %v4076_v45 }
 0x199   : > { %3200 = vmatmul.mubr.bf16.gmra.mxu1 %v4081_v46 }
 0x19a   : > { %3251 = vmatprep.mubr.bf16.mxu1 %v4053_v10 }
 0x241   : > { %v3189_v50 = vpop.f32.mrf.mxu1 }
 0x242   : > { %v860_v56 = vadd.f32 %v3189_v50, %v2972_v52 }
 0x243   : > { %v851_v51 = vpop.f32.mrf.mxu1 }
 0x244   : > { %v852_v54 = vadd.f32 %v2972_v52, %v851_v51  ;;  %v916_v63 = vmax.f32 %v860_v56, 0.0  ;;  %v3531_v51 = vld [vmem:[#allocation7 + $0x38] sm:$0xff]  }
 0x245   : > { %v3190_v53 = vpop.f32.mrf.mxu1  ;;  %3267 = vmatprep.subr.bf16.mxu0 %v3531_v51 }
 0x246   : > { %v863_v55 = vadd.f32 %v3190_v53, %v2972_v52  ;;  %v914_v61 = vmax.f32 %v852_v54, 0.0  ;;  %v3532_v53 = vld [vmem:[#allocation7 + $0x30] sm:$0xff]   ;;  %v3533_v54 = vld [vmem:[#allocation7 + $0x28] sm:$0xff]  }
 0x247   : > { %v854_v57 = vpop.f32.mrf.mxu1 }
 0x248   : > { %v855_v58 = vadd.f32 %v2972_v52, %v854_v57  ;;  %v917_v59 = vmax.f32 %v863_v55, 0.0  ;;  %v3534_v55 = vld [vmem:[#allocation7 + $0x20] sm:$0xff]  }
 0x249   : > { %v3193_v60 = vpop.f32.mrf.mxu1 }
 0x24a   : > { %v915_v62 = vmax.f32 %v855_v58, 0.0  ;;  %v931_v2 = vpack.c.bf16 %v917_v59, %v916_v63  ;;  %v876_v6 = vadd.f32 %v3193_v60, %v2972_v52 }
 0x24b   : > { %v867_v0 = vpop.f32.mrf.mxu1 }
 0x24c   : > { %v930_v1 = vpack.c.bf16 %v915_v62, %v914_v61  ;;  %v868_v4 = vadd.f32 %v2972_v52, %v867_v0  ;;  %v920_v14 = vmax.f32 %v876_v6, 0.0 }
 0x24d   : > { %v3194_v3 = vpop.f32.mrf.mxu1 }
 0x24e   : > { %v879_v5 = vadd.f32 %v3194_v3, %v2972_v52  ;;  %3219 = vmatprep.mubr.bf16.mxu0 %v930_v1  ;;  %v918_v12 = vmax.f32 %v868_v4, 0.0 }
 0x24f   : > { %v870_v7 = vpop.f32.mrf.mxu1  ;;  %3220 = vmatmul.mubr.bf16.vlgmr.msra.gmra.mxu0 %v931_v2 }
 0x250   : > { %v871_v8 = vadd.f32 %v2972_v52, %v870_v7  ;;  %v921_v9 = vmax.f32 %v879_v5, 0.0  ;;  %3268 = vmatpush3.bf16.msra.mxu0 %v3531_v51 }
 0x251   : > { %v3197_v11 = vpop.f32.mrf.mxu1  ;;  %3269 = vmatprep.subr.bf16.mxu0 %v3532_v53 }
 0x252   : > { %v919_v13 = vmax.f32 %v871_v8, 0.0  ;;  %v933_v17 = vpack.c.bf16 %v921_v9, %v920_v14  ;;  %v892_v21 = vadd.f32 %v3197_v11, %v2972_v52 }
 0x253   : > { %v883_v15 = vpop.f32.mrf.mxu1 }
 0x254   : > { %v932_v16 = vpack.c.bf16 %v919_v13, %v918_v12  ;;  %v884_v19 = vadd.f32 %v2972_v52, %v883_v15  ;;  %v924_v28 = vmax.f32 %v892_v21, 0.0  ;;  %3270 = vmatpush3.bf16.msra.mxu0 %v3532_v53 }
 0x255   : > { %v3198_v18 = vpop.f32.mrf.mxu1  ;;  %3271 = vmatprep.subr.bf16.mxu0 %v3533_v54 }
 0x256   : > { %v895_v20 = vadd.f32 %v3198_v18, %v2972_v52  ;;  %3223 = vmatprep.mubr.bf16.mxu0 %v932_v16  ;;  %v922_v26 = vmax.f32 %v884_v19, 0.0  ;;  %v3537_v18 = vld [vmem:[#allocation7 + $0x8] sm:$0xff]   ;;  %v3538_v19 = vld [vmem:[#allocation7] sm:$0xff]  }
 0x257   : > { %v886_v22 = vpop.f32.mrf.mxu1  ;;  %3224 = vmatmul.mubr.bf16.gmra.mxu0 %v933_v17  ;;  %v3536_v17 = vld [vmem:[#allocation7 + $0x10] sm:$0xff]  }
 0x258   : > { %v887_v23 = vadd.f32 %v2972_v52, %v886_v22  ;;  %v925_v24 = vmax.f32 %v895_v20, 0.0  ;;  %3272 = vmatpush3.bf16.msra.mxu0 %v3533_v54  ;;  %v2989_v22 = vld [vmem:[%s4874_s6] ss:$0 sm:$0xff] }
 0x259   : > { %v3201_v25 = vpop.f32.mrf.mxu1  ;;  %3273 = vmatprep.subr.bf16.mxu0 %v3534_v55 }
 0x25a   : > { %v923_v27 = vmax.f32 %v887_v23, 0.0  ;;  %v935_v31 = vpack.c.bf16 %v925_v24, %v924_v28  ;;  %v908_v35 = vadd.f32 %v3201_v25, %v2972_v52 }
 0x25b   : > { %v899_v29 = vpop.f32.mrf.mxu1 }
 0x25c   : > { %v934_v30 = vpack.c.bf16 %v923_v27, %v922_v26  ;;  %v900_v33 = vadd.f32 %v2972_v52, %v899_v29  ;;  %v928_v48 = vmax.f32 %v908_v35, 0.0  ;;  %3274 = vmatpush3.bf16.msra.mxu0 %v3534_v55 }
 0x25d   : > { %v3202_v32 = vpop.f32.mrf.mxu1 }
 0x25e   : > { %v911_v34 = vadd.f32 %v3202_v32, %v2972_v52  ;;  %3227 = vmatprep.mubr.bf16.mxu0 %v934_v30  ;;  %v926_v39 = vmax.f32 %v900_v33, 0.0 }
 0x25f   : > { %v902_v36 = vpop.f32.mrf.mxu1  ;;  %3228 = vmatmul.mubr.bf16.gmra.mxu0 %v935_v31 }
 0x260   : > { %v903_v37 = vadd.f32 %v2972_v52, %v902_v36  ;;  %v929_v38 = vmax.f32 %v911_v34, 0.0  ;;  %v3535_v52 = vld [vmem:[#allocation7 + $0x18] sm:$0xff]  }
 0x261   : > { %3275 = vmatprep.subr.bf16.mxu0 %v3535_v52 }
 0x262   : > { %v927_v47 = vmax.f32 %v903_v37, 0.0  ;;  %v937_v50 = vpack.c.bf16 %v929_v38, %v928_v48  ;;  %3276 = vmatpush3.bf16.msra.mxu0 %v3535_v52 }
 0x263   : > { %3277 = vmatprep.subr.bf16.mxu0 %v3536_v17 }
 0x264   : > { %v936_v49 = vpack.c.bf16 %v927_v47, %v926_v39 }
 0x266   : > { %3231 = vmatprep.mubr.bf16.mxu0 %v936_v49  ;;  %3278 = vmatpush3.bf16.msra.mxu0 %v3536_v17 }
 0x267   : > { %3232 = vmatmul.mubr.bf16.gmra.mxu0 %v937_v50  ;;  %3279 = vmatprep.subr.bf16.mxu0 %v3537_v18 }
 0x26a   : > { %3280 = vmatpush3.bf16.msra.mxu0 %v3537_v18 }
 0x26b   : > { %3281 = vmatprep.subr.bf16.mxu0 %v3538_v19 }
 0x26e   : > { %3282 = vmatpush3.bf16.msra.mxu0 %v3538_v19 }
 0x30f   : > { %v3221_v56 = vpop.f32.mrf.mxu0 }
 0x311   : > { %v1036_v57 = vpop.f32.mrf.mxu0 }
 0x313   : > { %v3222_v58 = vpop.f32.mrf.mxu0 }
 0x314   : > { %v1100_v15 = vpack.c.bf16 %v3222_v58, %v3221_v56 }
 0x315   : > { %v1039_v59 = vpop.f32.mrf.mxu0 }
 0x316   : > { %v1099_v16 = vpack.c.bf16 %v1039_v59, %v1036_v57 }
 0x317   : > { %v3225_v60 = vpop.f32.mrf.mxu0 }
 0x319   : > { %v1052_v61 = vpop.f32.mrf.mxu0 }
 0x31b   : > { %v3226_v62 = vpop.f32.mrf.mxu0 }
 0x31c   : > { %v1102_v13 = vpack.c.bf16 %v3226_v62, %v3225_v60 }
 0x31d   : > { %v1055_v63 = vpop.f32.mrf.mxu0 }
 0x31e   : > { %v1101_v14 = vpack.c.bf16 %v1055_v63, %v1052_v61 }
 0x31f   : > { %v3229_v0 = vpop.f32.mrf.mxu0 }
 0x321   : > { %v1068_v1 = vpop.f32.mrf.mxu0 }
 0x323   : > { %v3230_v2 = vpop.f32.mrf.mxu0 }
 0x324   : > { %v1104_v11 = vpack.c.bf16 %v3230_v2, %v3229_v0 }
 0x325   : > { %v1071_v3 = vpop.f32.mrf.mxu0 }
 0x326   : > { %v1103_v12 = vpack.c.bf16 %v1071_v3, %v1068_v1 }
 0x327   : > { %v3233_v4 = vpop.f32.mrf.mxu0 }
 0x329   : > { %v1084_v5 = vpop.f32.mrf.mxu0 }
 0x32b   : > { %v3234_v6 = vpop.f32.mrf.mxu0 }
 0x32c   : > { %v1106_v7 = vpack.c.bf16 %v3234_v6, %v3233_v4 }
 0x32d   : > { %v1087_v8 = vpop.f32.mrf.mxu0 }
 0x32e   : > { %v1105_v9 = vpack.c.bf16 %v1087_v8, %v1084_v5  ;;  %3235 = vmatprep.subr.bf16.mxu1 %v1106_v7 }
 0x32f   : > { %3236 = vmatpush3.bf16.msra.mxu1 %v1106_v7 }
 0x330   : > { %3237 = vmatprep.subr.bf16.mxu1 %v1105_v9 }
 0x333   : > { %3238 = vmatpush3.bf16.msra.mxu1 %v1105_v9 }
 0x334   : > { %3239 = vmatprep.subr.bf16.mxu1 %v1104_v11 }
 0x337   : > { %3240 = vmatpush3.bf16.msra.mxu1 %v1104_v11 }
 0x338   : > { %3241 = vmatprep.subr.bf16.mxu1 %v1103_v12 }
 0x33b   : > { %3242 = vmatpush3.bf16.msra.mxu1 %v1103_v12 }
 0x33c   : > { %3243 = vmatprep.subr.bf16.mxu1 %v1102_v13 }
 0x33f   : > { %3244 = vmatpush3.bf16.msra.mxu1 %v1102_v13 }
 0x340   : > { %3245 = vmatprep.subr.bf16.mxu1 %v1101_v14 }
 0x343   : > { %3246 = vmatpush3.bf16.msra.mxu1 %v1101_v14 }
 0x344   : > { %3247 = vmatprep.subr.bf16.mxu1 %v1100_v15 }
 0x347   : > { %3248 = vmatpush3.bf16.msra.mxu1 %v1100_v15 }
 0x348   : > { %3249 = vmatprep.subr.bf16.mxu1 %v1099_v16 }
 0x34b   : > { %3250 = vmatpush3.bf16.msra.mxu1 %v1099_v16 }
 0x34e   : > { %3252 = vmatmul.mubr.bf16.vlgmr.msra.gmra.mxu1 %v4057_v40 }
 0x34f   : > { %3255 = vmatprep.mubr.bf16.mxu1 %v4060_v41 }
 0x356   : > { %3256 = vmatmul.mubr.bf16.gmra.mxu1 %v4065_v42 }
 0x357   : > { %3259 = vmatprep.mubr.bf16.mxu1 %v4068_v43 }
 0x35e   : > { %3260 = vmatmul.mubr.bf16.gmra.mxu1 %v4073_v44 }
 0x35f   : > { %3263 = vmatprep.mubr.bf16.mxu1 %v4076_v45 }
 0x366   : > { %3264 = vmatmul.mubr.bf16.gmra.mxu1 %v4081_v46 }
 0x367   : > { %3315 = vmatprep.mubr.bf16.mxu1 %v4053_v10 }
 0x40e   : > { %v3253_v20 = vpop.f32.mrf.mxu1 }
 0x40f   : > { %v1157_v26 = vadd.f32 %v3253_v20, %v2989_v22 }
 0x410   : > { %v1148_v21 = vpop.f32.mrf.mxu1 }
 0x411   : > { %v1149_v24 = vadd.f32 %v2989_v22, %v1148_v21  ;;  %v1213_v33 = vmax.f32 %v1157_v26, 0.0  ;;  %v3539_v21 = vld [vmem:[#allocation8 + $0x38] sm:$0xff]  }
 0x412   : > { %v3254_v23 = vpop.f32.mrf.mxu1  ;;  %3331 = vmatprep.subr.bf16.mxu0 %v3539_v21 }
 0x413   : > { %v1160_v25 = vadd.f32 %v3254_v23, %v2989_v22  ;;  %v1211_v31 = vmax.f32 %v1149_v24, 0.0  ;;  %v3540_v23 = vld [vmem:[#allocation8 + $0x30] sm:$0xff]   ;;  %v3541_v24 = vld [vmem:[#allocation8 + $0x28] sm:$0xff]  }
 0x414   : > { %v1151_v27 = vpop.f32.mrf.mxu1 }
 0x415   : > { %v1152_v28 = vadd.f32 %v2989_v22, %v1151_v27  ;;  %v1214_v29 = vmax.f32 %v1160_v25, 0.0  ;;  %v3542_v25 = vld [vmem:[#allocation8 + $0x20] sm:$0xff]  }
 0x416   : > { %v3257_v30 = vpop.f32.mrf.mxu1 }
 0x417   : > { %v1212_v32 = vmax.f32 %v1152_v28, 0.0  ;;  %v1228_v36 = vpack.c.bf16 %v1214_v29, %v1213_v33  ;;  %v1173_v47 = vadd.f32 %v3257_v30, %v2989_v22 }
 0x418   : > { %v1164_v34 = vpop.f32.mrf.mxu1 }
 0x419   : > { %v1227_v35 = vpack.c.bf16 %v1212_v32, %v1211_v31  ;;  %v1165_v38 = vadd.f32 %v2989_v22, %v1164_v34  ;;  %v1217_v55 = vmax.f32 %v1173_v47, 0.0 }
 0x41a   : > { %v3258_v37 = vpop.f32.mrf.mxu1 }
 0x41b   : > { %v1176_v39 = vadd.f32 %v3258_v37, %v2989_v22  ;;  %3283 = vmatprep.mubr.bf16.mxu0 %v1227_v35  ;;  %v1215_v53 = vmax.f32 %v1165_v38, 0.0 }
 0x41c   : > { %v1167_v48 = vpop.f32.mrf.mxu1  ;;  %3284 = vmatmul.mubr.bf16.vlgmr.msra.gmra.mxu0 %v1228_v36 }
 0x41d   : > { %v1168_v49 = vadd.f32 %v2989_v22, %v1167_v48  ;;  %v1218_v50 = vmax.f32 %v1176_v39, 0.0  ;;  %3332 = vmatpush3.bf16.msra.mxu0 %v3539_v21 }
 0x41e   : > { %v3261_v51 = vpop.f32.mrf.mxu1  ;;  %3333 = vmatprep.subr.bf16.mxu0 %v3540_v23 }
 0x41f   : > { %v1216_v54 = vmax.f32 %v1168_v49, 0.0  ;;  %v1230_v57 = vpack.c.bf16 %v1218_v50, %v1217_v55  ;;  %v1189_v61 = vadd.f32 %v3261_v51, %v2989_v22 }
 0x420   : > { %v1180_v52 = vpop.f32.mrf.mxu1 }
 0x421   : > { %v1229_v56 = vpack.c.bf16 %v1216_v54, %v1215_v53  ;;  %v1181_v59 = vadd.f32 %v2989_v22, %v1180_v52  ;;  %v1221_v4 = vmax.f32 %v1189_v61, 0.0  ;;  %3334 = vmatpush3.bf16.msra.mxu0 %v3540_v23 }
 0x422   : > { %v3262_v58 = vpop.f32.mrf.mxu1  ;;  %3335 = vmatprep.subr.bf16.mxu0 %v3541_v24 }
 0x423   : > { %v1192_v60 = vadd.f32 %v3262_v58, %v2989_v22  ;;  %3287 = vmatprep.mubr.bf16.mxu0 %v1229_v56  ;;  %v1219_v2 = vmax.f32 %v1181_v59, 0.0  ;;  %v3545_v58 = vld [vmem:[#allocation8 + $0x8] sm:$0xff]  }
 0x424   : > { %v1183_v62 = vpop.f32.mrf.mxu1  ;;  %3288 = vmatmul.mubr.bf16.gmra.mxu0 %v1230_v57  ;;  %v3544_v57 = vld [vmem:[#allocation8 + $0x10] sm:$0xff]  }
 0x425   : > { %v1184_v63 = vadd.f32 %v2989_v22, %v1183_v62  ;;  %v1222_v0 = vmax.f32 %v1192_v60, 0.0  ;;  %3336 = vmatpush3.bf16.msra.mxu0 %v3541_v24 }
 0x426   : > { %v3265_v1 = vpop.f32.mrf.mxu1  ;;  %3337 = vmatprep.subr.bf16.mxu0 %v3542_v25 }
 0x427   : > { %v1220_v3 = vmax.f32 %v1184_v63, 0.0  ;;  %v1232_v7 = vpack.c.bf16 %v1222_v0, %v1221_v4  ;;  %v1205_v12 = vadd.f32 %v3265_v1, %v2989_v22 }
 0x428   : > { %v1196_v5 = vpop.f32.mrf.mxu1 }
 0x429   : > { %v1231_v6 = vpack.c.bf16 %v1220_v3, %v1219_v2  ;;  %v1197_v9 = vadd.f32 %v2989_v22, %v1196_v5  ;;  %v1225_v18 = vmax.f32 %v1205_v12, 0.0  ;;  %3338 = vmatpush3.bf16.msra.mxu0 %v3542_v25 }
 0x42a   : > { %v3266_v8 = vpop.f32.mrf.mxu1 }
 0x42b   : > { %v1208_v11 = vadd.f32 %v3266_v8, %v2989_v22  ;;  %3291 = vmatprep.mubr.bf16.mxu0 %v1231_v6  ;;  %v1223_v16 = vmax.f32 %v1197_v9, 0.0  ;;  %v4171_v9 = vld [vmem:[%s4876_s8] ss:$0 sm:$0xff] }
 0x42c   : > { %v1199_v13 = vpop.f32.mrf.mxu1  ;;  %3292 = vmatmul.mubr.bf16.gmra.mxu0 %v1232_v7 }
 0x42d   : > { %v1200_v14 = vadd.f32 %v2989_v22, %v1199_v13  ;;  %v1226_v15 = vmax.f32 %v1208_v11, 0.0  ;;  %v3543_v22 = vld [vmem:[#allocation8 + $0x18] sm:$0xff]  }
 0x42e   : > { %3339 = vmatprep.subr.bf16.mxu0 %v3543_v22 }
 0x42f   : > { %v1224_v17 = vmax.f32 %v1200_v14, 0.0  ;;  %v1234_v20 = vpack.c.bf16 %v1226_v15, %v1225_v18  ;;  %3340 = vmatpush3.bf16.msra.mxu0 %v3543_v22 }
 0x430   : > { %3341 = vmatprep.subr.bf16.mxu0 %v3544_v57 }
 0x431   : > { %v1233_v19 = vpack.c.bf16 %v1224_v17, %v1223_v16 }
 0x433   : > { %3295 = vmatprep.mubr.bf16.mxu0 %v1233_v19  ;;  %3342 = vmatpush3.bf16.msra.mxu0 %v3544_v57 }
 0x434   : > { %3296 = vmatmul.mubr.bf16.gmra.mxu0 %v1234_v20  ;;  %3343 = vmatprep.subr.bf16.mxu0 %v3545_v58 }
 0x437   : > { %3344 = vmatpush3.bf16.msra.mxu0 %v3545_v58 }
 0x4dc   : > { %v3285_v26 = vpop.f32.mrf.mxu0 }
 0x4de   : > { %v1333_v27 = vpop.f32.mrf.mxu0 }
 0x4e0   : > { %v3286_v28 = vpop.f32.mrf.mxu0 }
 0x4e1   : > { %v1397_v52 = vpack.c.bf16 %v3286_v28, %v3285_v26 }
 0x4e2   : > { %v1336_v29 = vpop.f32.mrf.mxu0 }
 0x4e3   : > { %v1396_v56 = vpack.c.bf16 %v1336_v29, %v1333_v27 }
 0x4e4   : > { %v3289_v30 = vpop.f32.mrf.mxu0 }
 0x4e6   : > { %v1349_v31 = vpop.f32.mrf.mxu0 }
 0x4e8   : > { %v3290_v32 = vpop.f32.mrf.mxu0 }
 0x4e9   : > { %v1399_v54 = vpack.c.bf16 %v3290_v32, %v3289_v30 }
 0x4ea   : > { %v1352_v33 = vpop.f32.mrf.mxu0 }
 0x4eb   : > { %v1398_v55 = vpack.c.bf16 %v1352_v33, %v1349_v31 }
 0x4ec   : > { %v3293_v34 = vpop.f32.mrf.mxu0 }
 0x4ee   : > { %v1365_v35 = vpop.f32.mrf.mxu0 }
 0x4f0   : > { %v3294_v36 = vpop.f32.mrf.mxu0 }
 0x4f1   : > { %v1401_v51 = vpack.c.bf16 %v3294_v36, %v3293_v34 }
 0x4f2   : > { %v1368_v37 = vpop.f32.mrf.mxu0 }
 0x4f3   : > { %v1400_v53 = vpack.c.bf16 %v1368_v37, %v1365_v35 }
 0x4f4   : > { %v3297_v38 = vpop.f32.mrf.mxu0 }
 0x4f6   : > { %v1381_v39 = vpop.f32.mrf.mxu0 }
 0x4f8   : > { %v3298_v47 = vpop.f32.mrf.mxu0 }
 0x4f9   : > { %v1403_v48 = vpack.c.bf16 %v3298_v47, %v3297_v38 }
 0x4fa   : > { %v1384_v49 = vpop.f32.mrf.mxu0 }
 0x4fb   : > { %v1402_v50 = vpack.c.bf16 %v1384_v49, %v1381_v39  ;;  %3299 = vmatprep.subr.bf16.mxu1 %v1403_v48 }
 0x4fc   : > { %3300 = vmatpush3.bf16.msra.mxu1 %v1403_v48 }
 0x4fd   : > { %3301 = vmatprep.subr.bf16.mxu1 %v1402_v50 }
 0x500   : > { %3302 = vmatpush3.bf16.msra.mxu1 %v1402_v50 }
 0x501   : > { %3303 = vmatprep.subr.bf16.mxu1 %v1401_v51 }
 0x504   : > { %3304 = vmatpush3.bf16.msra.mxu1 %v1401_v51 }
 0x505   : > { %3305 = vmatprep.subr.bf16.mxu1 %v1400_v53 }
 0x508   : > { %3306 = vmatpush3.bf16.msra.mxu1 %v1400_v53 }
 0x509   : > { %3307 = vmatprep.subr.bf16.mxu1 %v1399_v54 }
 0x50c   : > { %3308 = vmatpush3.bf16.msra.mxu1 %v1399_v54 }
 0x50d   : > { %3309 = vmatprep.subr.bf16.mxu1 %v1398_v55 }
 0x510   : > { %3310 = vmatpush3.bf16.msra.mxu1 %v1398_v55 }
 0x511   : > { %3311 = vmatprep.subr.bf16.mxu1 %v1397_v52 }
 0x514   : > { %3312 = vmatpush3.bf16.msra.mxu1 %v1397_v52 }
 0x515   : > { %3313 = vmatprep.subr.bf16.mxu1 %v1396_v56 }
 0x518   : > { %3314 = vmatpush3.bf16.msra.mxu1 %v1396_v56 }
 0x51b   : > { %3316 = vmatmul.mubr.bf16.vlgmr.msra.gmra.mxu1 %v4057_v40  ;;  %v3546_v40 = vld [vmem:[#allocation8] sm:$0xff]  }
 0x51c   : > { %3319 = vmatprep.mubr.bf16.mxu1 %v4060_v41  ;;  %3345 = vmatprep.subr.bf16.mxu0 %v3546_v40  ;;  %v1806_v41 = vlaneseq }
 0x51d   : > { %3346 = vmatpush3.bf16.msra.mxu0 %v3546_v40 }
 0x523   : > { %3320 = vmatmul.mubr.bf16.gmra.mxu1 %v4065_v42  ;;  %v1807_v42 = vshrl.u32 %v1806_v41, 7 }
 0x524   : > { %3323 = vmatprep.mubr.bf16.mxu1 %v4068_v43  ;;  %v1805_v43 = vld [vmem:[%s4017_s20] sm:$0xff]  ;;  %s3700_s20 = scalar_lea.vmem %s3699_s7, 256 }
 0x525   : > { %v1875_v59 = vsub.s32 1, %v1807_v42  ;;  %v2009_v61 = vsub.s32 3, %v1807_v42  ;;  %v2076_v63 = vsub.s32 4, %v1807_v42  ;;  %v2143_v1 = vsub.s32 5, %v1807_v42  ;;  %p3702_p6 = scmp.lt.s32.totalorder %s3700_s20, %s3694_s14 }
 0x526   : > { %v2210_v3 = vsub.s32 6, %v1807_v42  ;;  %v2277_v5 = vsub.s32 7, %v1807_v42 }
 0x527   : > { %v4108_v60 = vrot.slane %v1805_v43, %v1875_v59  ;;  %v4122_v62 = vrot.slane %v1805_v43, %v2009_v61  ;;  %v4126_v0 = vrot.slane %v1805_v43, %v2076_v63  ;;  %v4134_v2 = vrot.slane %v1805_v43, %v2143_v1  ;;  %p3703_p4 = por %p3702_p6, %p3701_p11 }
 0x528   : > { %v4140_v4 = vrot.slane %v1805_v43, %v2210_v3  ;;  %v4148_v6 = vrot.slane %v1805_v43, %v2277_v5 }
 0x529   : > { %1878 = vbcast.lane.b32.xlu1 %v4108_v60, 256  ;;  %p3704_p7 = pnand %p3703_p4, %p3697_p10 }
 0x52b   : > { %3324 = vmatmul.mubr.bf16.gmra.mxu1 %v4073_v44  ;;  %v1808_v44 = vsub.s32 0, %v1807_v42 }
 0x52c   : > { %3327 = vmatprep.mubr.bf16.mxu1 %v4076_v45 }
 0x52d   : > { %v4110_v45 = vrot.slane %v1805_v43, %v1808_v44  ;;  %1882 = vbcast.lane.b32.xlu1 %v4108_v60, 264 }
 0x52f   : > { %1811 = vbcast.lane.b32.xlu0 %v4110_v45, 256 }
 0x533   : > { %3328 = vmatmul.mubr.bf16.gmra.mxu1 %v4081_v46  ;;  %1815 = vbcast.lane.b32.xlu0 %v4110_v45, 264 }
 0x534   : > { %3379 = vmatprep.mubr.bf16.mxu1 %v4053_v10  ;;  %v1942_v10 = vsub.s32 2, %v1807_v42 }
 0x536   : > { %v4116_v46 = vrot.slane %v1805_v43, %v1942_v10 }
 0x538   : > { %1949 = vbcast.lane.b32.xlu1 %v4116_v46, 264  ;;  %1945 = vbcast.lane.b32.xlu0 %v4116_v46, 256 }
 0x53c   : > { %1886 = vbcast.lane.b32.xlu1 %v4108_v60, 272  ;;  %1819 = vbcast.lane.b32.xlu0 %v4110_v45, 272 }
 0x540   : > { %2016 = vbcast.lane.b32.xlu1 %v4122_v62, 264  ;;  %2012 = vbcast.lane.b32.xlu0 %v4122_v62, 256 }
 0x544   : > { %2079 = vbcast.lane.b32.xlu1 %v4126_v0, 256  ;;  %1953 = vbcast.lane.b32.xlu0 %v4116_v46, 272 }
 0x548   : > { %1823 = vbcast.lane.b32.xlu1 %v4110_v45, 280  ;;  %2083 = vbcast.lane.b32.xlu0 %v4126_v0, 264 }
 0x54c   : > { %2020 = vbcast.lane.b32.xlu1 %v4122_v62, 272  ;;  %1890 = vbcast.lane.b32.xlu0 %v4108_v60, 280 }
 0x550   : > { %2150 = vbcast.lane.b32.xlu1 %v4134_v2, 264  ;;  %2146 = vbcast.lane.b32.xlu0 %v4134_v2, 256 }
 0x554   : > { %2087 = vbcast.lane.b32.xlu1 %v4126_v0, 272  ;;  %1957 = vbcast.lane.b32.xlu0 %v4116_v46, 280 }
 0x558   : > { %2217 = vbcast.lane.b32.xlu1 %v4140_v4, 264  ;;  %2213 = vbcast.lane.b32.xlu0 %v4140_v4, 256 }
 0x55c   : > { %1894 = vbcast.lane.b32.xlu1 %v4108_v60, 288  ;;  %1827 = vbcast.lane.b32.xlu0 %v4110_v45, 288 }
 0x560   : > { %2154 = vbcast.lane.b32.xlu1 %v4134_v2, 272  ;;  %2024 = vbcast.lane.b32.xlu0 %v4122_v62, 280 }
 0x564   : > { %2284 = vbcast.lane.b32.xlu1 %v4148_v6, 264  ;;  %2280 = vbcast.lane.b32.xlu0 %v4148_v6, 256 }
 0x568   : > { %2091 = vbcast.lane.b32.xlu1 %v4126_v0, 280  ;;  %1961 = vbcast.lane.b32.xlu0 %v4116_v46, 288 }
 0x56c   : > { %1831 = vbcast.lane.b32.xlu1 %v4110_v45, 296  ;;  %2221 = vbcast.lane.b32.xlu0 %v4140_v4, 272 }
 0x570   : > { %2028 = vbcast.lane.b32.xlu1 %v4122_v62, 288  ;;  %1898 = vbcast.lane.b32.xlu0 %v4108_v60, 296 }
 0x574   : > { %2288 = vbcast.lane.b32.xlu1 %v4148_v6, 272  ;;  %2158 = vbcast.lane.b32.xlu0 %v4134_v2, 280 }
 0x578   : > { %2095 = vbcast.lane.b32.xlu1 %v4126_v0, 288  ;;  %1965 = vbcast.lane.b32.xlu0 %v4116_v46, 296 }
 0x57c   : > { %1835 = vbcast.lane.b32.xlu1 %v4110_v45, 304  ;;  %2225 = vbcast.lane.b32.xlu0 %v4140_v4, 280 }
 0x580   : > { %2032 = vbcast.lane.b32.xlu1 %v4122_v62, 296  ;;  %1902 = vbcast.lane.b32.xlu0 %v4108_v60, 304 }
 0x584   : > { %2292 = vbcast.lane.b32.xlu1 %v4148_v6, 280  ;;  %2162 = vbcast.lane.b32.xlu0 %v4134_v2, 288 }
 0x588   : > { %2099 = vbcast.lane.b32.xlu1 %v4126_v0, 296  ;;  %1969 = vbcast.lane.b32.xlu0 %v4116_v46, 304 }
 0x58c   : > { %1839 = vbcast.lane.b32.xlu1 %v4110_v45, 312  ;;  %2229 = vbcast.lane.b32.xlu0 %v4140_v4, 288 }
 0x590   : > { %2036 = vbcast.lane.b32.xlu1 %v4122_v62, 304  ;;  %1906 = vbcast.lane.b32.xlu0 %v4108_v60, 312 }
 0x594   : > { %2296 = vbcast.lane.b32.xlu1 %v4148_v6, 288  ;;  %2166 = vbcast.lane.b32.xlu0 %v4134_v2, 296 }
 0x598   : > { %2103 = vbcast.lane.b32.xlu1 %v4126_v0, 304  ;;  %1973 = vbcast.lane.b32.xlu0 %v4116_v46, 312 }
 0x59c   : > { %1843 = vbcast.lane.b32.xlu1 %v4110_v45, 320  ;;  %2233 = vbcast.lane.b32.xlu0 %v4140_v4, 296 }
 0x5a0   : > { %2040 = vbcast.lane.b32.xlu1 %v4122_v62, 312  ;;  %1910 = vbcast.lane.b32.xlu0 %v4108_v60, 320 }
 0x5a4   : > { %2300 = vbcast.lane.b32.xlu1 %v4148_v6, 296  ;;  %2170 = vbcast.lane.b32.xlu0 %v4134_v2, 304 }
 0x5a8   : > { %2107 = vbcast.lane.b32.xlu1 %v4126_v0, 312  ;;  %1977 = vbcast.lane.b32.xlu0 %v4116_v46, 320 }
 0x5ac   : > { %1847 = vbcast.lane.b32.xlu1 %v4110_v45, 328  ;;  %2237 = vbcast.lane.b32.xlu0 %v4140_v4, 304 }
 0x5b0   : > { %2044 = vbcast.lane.b32.xlu1 %v4122_v62, 320  ;;  %1914 = vbcast.lane.b32.xlu0 %v4108_v60, 328 }
 0x5b4   : > { %2304 = vbcast.lane.b32.xlu1 %v4148_v6, 304  ;;  %2174 = vbcast.lane.b32.xlu0 %v4134_v2, 312 }
 0x5b8   : > { %2111 = vbcast.lane.b32.xlu1 %v4126_v0, 320  ;;  %1981 = vbcast.lane.b32.xlu0 %v4116_v46, 328 }
 0x5bc   : > { %1851 = vbcast.lane.b32.xlu1 %v4110_v45, 336  ;;  %2241 = vbcast.lane.b32.xlu0 %v4140_v4, 312 }
 0x5c0   : > { %2048 = vbcast.lane.b32.xlu1 %v4122_v62, 328  ;;  %1918 = vbcast.lane.b32.xlu0 %v4108_v60, 336 }
 0x5c4   : > { %2308 = vbcast.lane.b32.xlu1 %v4148_v6, 312  ;;  %2178 = vbcast.lane.b32.xlu0 %v4134_v2, 320 }
 0x5c8   : > { %2115 = vbcast.lane.b32.xlu1 %v4126_v0, 328  ;;  %1985 = vbcast.lane.b32.xlu0 %v4116_v46, 336 }
 0x5cc   : > { %1855 = vbcast.lane.b32.xlu1 %v4110_v45, 344  ;;  %2245 = vbcast.lane.b32.xlu0 %v4140_v4, 320 }
 0x5d0   : > { %2052 = vbcast.lane.b32.xlu1 %v4122_v62, 336  ;;  %1922 = vbcast.lane.b32.xlu0 %v4108_v60, 344 }
 0x5d4   : > { %2312 = vbcast.lane.b32.xlu1 %v4148_v6, 320  ;;  %2182 = vbcast.lane.b32.xlu0 %v4134_v2, 328 }
 0x5d8   : > { %2119 = vbcast.lane.b32.xlu1 %v4126_v0, 336  ;;  %1989 = vbcast.lane.b32.xlu0 %v4116_v46, 344 }
 0x5db   : > { %v3317_v7 = vpop.f32.mrf.mxu1 }
 0x5dc   : > { %v1454_v14 = vadd.f32 %v3317_v7, %v4171_v9  ;;  %1859 = vbcast.lane.b32.xlu1 %v4110_v45, 352  ;;  %2249 = vbcast.lane.b32.xlu0 %v4140_v4, 328 }
 0x5dd   : > { %v1445_v8 = vpop.f32.mrf.mxu1 }
 0x5de   : > { %v1446_v12 = vadd.f32 %v4171_v9, %v1445_v8  ;;  %v1510_v21 = vmax.f32 %v1454_v14, 0.0  ;;  %v4241_v8 = vpop.permute.xlu1 %1878 }
 0x5df   : > { %v3318_v11 = vpop.f32.mrf.mxu1 }
 0x5e0   : > { %v1457_v13 = vadd.f32 %v3318_v11, %v4171_v9  ;;  %v1508_v19 = vmax.f32 %v1446_v12, 0.0  ;;  %2056 = vbcast.lane.b32.xlu1 %v4122_v62, 344  ;;  %1926 = vbcast.lane.b32.xlu0 %v4108_v60, 352 }
 0x5e1   : > { %v1448_v15 = vpop.f32.mrf.mxu1 }
 0x5e2   : > { %v1449_v16 = vadd.f32 %v4171_v9, %v1448_v15  ;;  %v1511_v17 = vmax.f32 %v1457_v13, 0.0  ;;  %v4247_v11 = vpop.permute.xlu1 %1882 }
 0x5e3   : > { %v3321_v18 = vpop.f32.mrf.mxu1 }
 0x5e4   : > { %v1509_v20 = vmax.f32 %v1449_v16, 0.0  ;;  %v1525_v25 = vpack.c.bf16 %v1511_v17, %v1510_v21  ;;  %v1470_v28 = vadd.f32 %v3321_v18, %v4171_v9  ;;  %2316 = vbcast.lane.b32.xlu1 %v4148_v6, 328  ;;  %2186 = vbcast.lane.b32.xlu0 %v4134_v2, 336 }
 0x5e5   : > { %v1461_v23 = vpop.f32.mrf.mxu1 }
 0x5e6   : > { %v1524_v24 = vpack.c.bf16 %v1509_v20, %v1508_v19  ;;  %v1462_v26 = vadd.f32 %v4171_v9, %v1461_v23  ;;  %v1514_v35 = vmax.f32 %v1470_v28, 0.0  ;;  %v4253_v13 = vpop.permute.xlu1 %1949 }
 0x5e7   : > { %v3322_v22 = vpop.f32.mrf.mxu1 }
 0x5e8   : > { %v1473_v27 = vadd.f32 %v3322_v22, %v4171_v9  ;;  %3347 = vmatprep.mubr.bf16.mxu0 %v1524_v24  ;;  %v1512_v33 = vmax.f32 %v1462_v26, 0.0  ;;  %2123 = vbcast.lane.b32.xlu1 %v4126_v0, 344 }
 0x5e9   : > { %v1464_v29 = vpop.f32.mrf.mxu1  ;;  %3348 = vmatmul.mubr.bf16.vlgmr.msra.gmra.mxu0 %v1525_v25  ;;  %1993 = vbcast.lane.b32.xlu0 %v4116_v46, 352 }
 0x5ea   : > { %v1465_v30 = vadd.f32 %v4171_v9, %v1464_v29  ;;  %v1515_v31 = vmax.f32 %v1473_v27, 0.0  ;;  %v4259_v15 = vpop.permute.xlu1 %1886 }
 0x5eb   : > { %v3325_v32 = vpop.f32.mrf.mxu1 }
 0x5ec   : > { %v1513_v34 = vmax.f32 %v1465_v30, 0.0  ;;  %v1527_v38 = vpack.c.bf16 %v1515_v31, %v1514_v35  ;;  %v1486_v49 = vadd.f32 %v3325_v32, %v4171_v9  ;;  %1863 = vbcast.lane.b32.xlu1 %v4110_v45, 360 }
 0x5ed   : > { %v1477_v36 = vpop.f32.mrf.mxu1  ;;  %2253 = vbcast.lane.b32.xlu0 %v4140_v4, 336 }
 0x5ee   : > { %v1526_v37 = vpack.c.bf16 %v1513_v34, %v1512_v33  ;;  %v1478_v47 = vadd.f32 %v4171_v9, %v1477_v36  ;;  %v1518_v56 = vmax.f32 %v1486_v49, 0.0  ;;  %v4265_v17 = vpop.permute.xlu1 %2016 }
 0x5ef   : > { %v3326_v39 = vpop.f32.mrf.mxu1 }
 0x5f0   : > { %v1489_v48 = vadd.f32 %v3326_v39, %v4171_v9  ;;  %3351 = vmatprep.mubr.bf16.mxu0 %v1526_v37  ;;  %v1516_v55 = vmax.f32 %v1478_v47, 0.0  ;;  %2060 = vbcast.lane.b32.xlu1 %v4122_v62, 352 }
 0x5f1   : > { %v1480_v50 = vpop.f32.mrf.mxu1  ;;  %3352 = vmatmul.mubr.bf16.gmra.mxu0 %v1527_v38  ;;  %1930 = vbcast.lane.b32.xlu0 %v4108_v60, 360 }
 0x5f2   : > { %v1481_v51 = vadd.f32 %v4171_v9, %v1480_v50  ;;  %v1519_v53 = vmax.f32 %v1489_v48, 0.0  ;;  %v4271_v19 = vpop.permute.xlu1 %2079 }
 0x5f3   : > { %v3329_v54 = vpop.f32.mrf.mxu1 }
 0x5f4   : > { %v1517_v52 = vmax.f32 %v1481_v51, 0.0  ;;  %v1529_v40 = vpack.c.bf16 %v1519_v53, %v1518_v56  ;;  %v1502_v59 = vadd.f32 %v3329_v54, %v4171_v9  ;;  %2320 = vbcast.lane.b32.xlu1 %v4148_v6, 336 }
 0x5f5   : > { %v1493_v57 = vpop.f32.mrf.mxu1 }
 0x5f6   : > { %v1528_v58 = vpack.c.bf16 %v1517_v52, %v1516_v55  ;;  %v1494_v42 = vadd.f32 %v4171_v9, %v1493_v57  ;;  %v1522_v3 = vmax.f32 %v1502_v59, 0.0  ;;  %v4277_v21 = vpop.permute.xlu1 %1823 }
 0x5f7   : > { %v3330_v41 = vpop.f32.mrf.mxu1 }
 0x5f8   : > { %v1505_v43 = vadd.f32 %v3330_v41, %v4171_v9  ;;  %3355 = vmatprep.mubr.bf16.mxu0 %v1528_v58  ;;  %v1520_v63 = vmax.f32 %v1494_v42, 0.0  ;;  %2127 = vbcast.lane.b32.xlu1 %v4126_v0, 352 }
 0x5f9   : > { %v1496_v44 = vpop.f32.mrf.mxu1  ;;  %3356 = vmatmul.mubr.bf16.gmra.mxu0 %v1529_v40 }
 0x5fa   : > { %v1497_v10 = vadd.f32 %v4171_v9, %v1496_v44  ;;  %v1523_v61 = vmax.f32 %v1505_v43, 0.0  ;;  %v4243_v9 = vpop.permute.xlu0 %1811  ;;  %2190 = vbcast.lane.b32.xlu0 %v4134_v2, 344  ;;  %v4283_v24 = vpop.permute.xlu1 %2020 }
 0x5fc   : > { %v1521_v1 = vmax.f32 %v1497_v10, 0.0  ;;  %v1531_v7 = vpack.c.bf16 %v1523_v61, %v1522_v3  ;;  %1867 = vbcast.lane.b32.xlu1 %v4110_v45, 368 }
 0x5fe   : > { %v1530_v5 = vpack.c.bf16 %v1521_v1, %v1520_v63  ;;  %v4249_v12 = vpop.permute.xlu0 %1815  ;;  %1997 = vbcast.lane.b32.xlu0 %v4116_v46, 360  ;;  %v4289_v22 = vpop.permute.xlu1 %2150 }
 0x600   : > { %3359 = vmatprep.mubr.bf16.mxu0 %v1530_v5  ;;  %2064 = vbcast.lane.b32.xlu1 %v4122_v62, 360 }
 0x601   : > { %3360 = vmatmul.mubr.bf16.gmra.mxu0 %v1531_v7 }
 0x602   : > { %v4255_v14 = vpop.permute.xlu0 %1945  ;;  %2257 = vbcast.lane.b32.xlu0 %v4140_v4, 344  ;;  %v4295_v27 = vpop.permute.xlu1 %2087 }
 0x604   : > { %2324 = vbcast.lane.b32.xlu1 %v4148_v6, 344 }
 0x606   : > { %v4261_v16 = vpop.permute.xlu0 %1819  ;;  %1934 = vbcast.lane.b32.xlu0 %v4108_v60, 368  ;;  %v4301_v29 = vpop.permute.xlu1 %2217 }
 0x608   : > { %2131 = vbcast.lane.b32.xlu1 %v4126_v0, 360 }
 0x60a   : > { %v4267_v18 = vpop.permute.xlu0 %2012  ;;  %2194 = vbcast.lane.b32.xlu0 %v4134_v2, 352  ;;  %v4307_v30 = vpop.permute.xlu1 %1894 }
 0x60c   : > { %1871 = vbcast.lane.b32.xlu1 %v4110_v45, 376 }
 0x60e   : > { %v4273_v20 = vpop.permute.xlu0 %1953  ;;  %2001 = vbcast.lane.b32.xlu0 %v4116_v46, 368 }
 0x610   : > { %2068 = vbcast.lane.b32.xlu1 %v4122_v62, 368 }
 0x612   : > { %v4279_v23 = vpop.permute.xlu0 %2083  ;;  %2261 = vbcast.lane.b32.xlu0 %v4140_v4, 352 }
 0x614   : > { %2328 = vbcast.lane.b32.xlu1 %v4148_v6, 352 }
 0x616   : > { %v4285_v25 = vpop.permute.xlu0 %1890  ;;  %1938 = vbcast.lane.b32.xlu0 %v4108_v60, 376  ;;  %v4313_v60 = vpop.permute.xlu1 %2154 }
 0x618   : > { %2135 = vbcast.lane.b32.xlu1 %v4126_v0, 368 }
 0x61a   : > { %v4291_v26 = vpop.permute.xlu0 %2146  ;;  %2198 = vbcast.lane.b32.xlu0 %v4134_v2, 360 }
 0x61c   : > { %2072 = vbcast.lane.b32.xlu1 %v4122_v62, 376 }
 0x61e   : > { %v4297_v28 = vpop.permute.xlu0 %1957  ;;  %2005 = vbcast.lane.b32.xlu0 %v4116_v46, 376  ;;  %v4321_v46 = vpop.permute.xlu1 %2284 }
 0x620   : > { %2332 = vbcast.lane.b32.xlu1 %v4148_v6, 360 }
 0x622   : > { %v4303_v45 = vpop.permute.xlu0 %2213  ;;  %2265 = vbcast.lane.b32.xlu0 %v4140_v4, 360  ;;  %v4327_v62 = vpop.permute.xlu1 %2091 }
 0x624   : > { %2269 = vbcast.lane.b32.xlu1 %v4140_v4, 368 }
 0x626   : > { %v4309_v31 = vpop.permute.xlu0 %1827  ;;  %2202 = vbcast.lane.b32.xlu0 %v4134_v2, 368  ;;  %v4333_v53 = vpop.permute.xlu1 %1831 }
 0x627   : > { %4917 = vst [vmem:[#allocation20_spill] sm:$0xff] %v4333_v53 }
 0x628   : > { %2336 = vbcast.lane.b32.xlu1 %v4148_v6, 368 }
 0x62a   : > { %v4316_v32 = vpop.permute.xlu0 %2024  ;;  %2139 = vbcast.lane.b32.xlu0 %v4126_v0, 376  ;;  %v4337_v56 = vpop.permute.xlu1 %2028 }
 0x62c   : > { %2340 = vbcast.lane.b32.xlu1 %v4148_v6, 376 }
 0x62e   : > { %v4323_v33 = vpop.permute.xlu0 %2280  ;;  %2206 = vbcast.lane.b32.xlu0 %v4134_v2, 376  ;;  %v4341_v42 = vpop.permute.xlu1 %2288 }
 0x632   : > { %v4330_v34 = vpop.permute.xlu0 %1961  ;;  %2273 = vbcast.lane.b32.xlu0 %v4140_v4, 376  ;;  %v4345_v44 = vpop.permute.xlu1 %2095 }
 0x636   : > { %v4335_v6 = vpop.permute.xlu0 %2221  ;;  %v4349_v1 = vpop.permute.xlu1 %1835 }
 0x63a   : > { %v4339_v58 = vpop.permute.xlu0 %1898  ;;  %v4353_v7 = vpop.permute.xlu1 %2032 }
 0x63b   : > { %4918 = vst [vmem:[#allocation21_spill] sm:$0xff] %v4339_v58  ;;  %4920 = vst [vmem:[#allocation23_spill] sm:$0xff] %v4353_v7 }
 0x63e   : > { %v4343_v43 = vpop.permute.xlu0 %2158 }
 0x642   : > { %v4347_v10 = vpop.permute.xlu0 %1965 }
 0x643   : > { %4919 = vst [vmem:[#allocation22_spill] sm:$0xff] %v4347_v10 }
 0x646   : > { %v4351_v3 = vpop.permute.xlu0 %2225 }
 0x6a9   : > { %v3349_v35 = vpop.f32.mrf.mxu0 }
 0x6ab   : > { %v1630_v36 = vpop.f32.mrf.mxu0 }
 0x6ad   : > { %v3350_v37 = vpop.f32.mrf.mxu0 }
 0x6ae   : > { %v1694_v5 = vpack.c.bf16 %v3350_v37, %v3349_v35  ;;  %v3556_v35 = vld [vmem:[%s4045_s18 + $0x10] sm:$0xff]  }
 0x6af   : > { %v1633_v0 = vpop.f32.mrf.mxu0 }
 0x6b1   : > { %v3353_v38 = vpop.f32.mrf.mxu0 }
 0x6b3   : > { %v1646_v39 = vpop.f32.mrf.mxu0 }
 0x6b5   : > { %v3354_v47 = vpop.f32.mrf.mxu0 }
 0x6b6   : > { %v1696_v61 = vpack.c.bf16 %v3354_v47, %v3353_v38  ;;  %v1693_v38 = vpack.c.bf16 %v1633_v0, %v1630_v36  ;;  %v3558_v0 = vld [vmem:[%s4045_s18 + $0x20] sm:$0xff]  }
 0x6b7   : > { %v1649_v48 = vpop.f32.mrf.mxu0 }
 0x6b8   : > { %v1695_v63 = vpack.c.bf16 %v1649_v48, %v1646_v39  ;;  %v4357_v39 = vpop.permute.xlu1 %2292  ;;  %v3555_v48 = vld [vmem:[%s4045_s18 + $0x8] sm:$0xff]  }
 0x6b9   : > { %v3357_v49 = vpop.f32.mrf.mxu0 }
 0x6bb   : > { %v1662_v50 = vpop.f32.mrf.mxu0 }
 0x6bc   : > { %v4363_v37 = vpop.permute.xlu1 %2099 }
 0x6bd   : > { %v3358_v51 = vpop.f32.mrf.mxu0  ;;  %4921 = vst [vmem:[#allocation24_spill] sm:$0xff] %v4363_v37 }
 0x6be   : > { %v1698_v41 = vpack.c.bf16 %v3358_v51, %v3357_v49  ;;  %v4355_v49 = vpop.permute.xlu0 %1902  ;;  %v3557_v51 = vld [vmem:[%s4045_s18 + $0x18] sm:$0xff]  }
 0x6bf   : > { %v1665_v2 = vpop.f32.mrf.mxu0 }
 0x6c0   : > { %v1697_v59 = vpack.c.bf16 %v1665_v2, %v1662_v50  ;;  %v4368_v36 = vpop.permute.xlu1 %1839 }
 0x6c1   : > { %v3361_v54 = vpop.f32.mrf.mxu0  ;;  %4922 = vst [vmem:[#allocation25_spill] sm:$0xff] %v4368_v36 }
 0x6c2   : > { %v4359_v47 = vpop.permute.xlu0 %2162 }
 0x6c3   : > { %v1678_v55 = vpop.f32.mrf.mxu0 }
 0x6c5   : > { %v3362_v52 = vpop.f32.mrf.mxu0 }
 0x6c6   : > { %v1700_v4 = vpack.c.bf16 %v3362_v52, %v3361_v54  ;;  %v4365_v50 = vpop.permute.xlu0 %1969  ;;  %v4373_v54 = vpop.permute.xlu1 %2036  ;;  %v3559_v52 = vld [vmem:[%s4045_s18 + $0x28] sm:$0xff]  }
 0x6c7   : > { %v1681_v57 = vpop.f32.mrf.mxu0 }
 0x6c8   : > { %v1699_v40 = vpack.c.bf16 %v1681_v57, %v1678_v55  ;;  %3363 = vmatprep.subr.bf16.mxu1 %v1700_v4 }
 0x6c9   : > { %3364 = vmatpush3.bf16.msra.mxu1 %v1700_v4  ;;  %v3560_v4 = vld [vmem:[%s4045_s18 + $0x30] sm:$0xff]  }
 0x6ca   : > { %3365 = vmatprep.subr.bf16.mxu1 %v1699_v40  ;;  %v4371_v2 = vpop.permute.xlu0 %2229  ;;  %v4379_v57 = vpop.permute.xlu1 %2296 }
 0x6cd   : > { %3366 = vmatpush3.bf16.msra.mxu1 %v1699_v40 }
 0x6ce   : > { %3367 = vmatprep.subr.bf16.mxu1 %v1698_v41  ;;  %v4375_v55 = vpop.permute.xlu0 %1906 }
 0x6cf   : > { %4923 = vst [vmem:[#allocation26_spill] sm:$0xff] %v4375_v55 }
 0x6d1   : > { %3368 = vmatpush3.bf16.msra.mxu1 %v1698_v41  ;;  %v3561_v41 = vld [vmem:[%s4045_s18 + $0x38] sm:$0xff]  }
 0x6d2   : > { %3369 = vmatprep.subr.bf16.mxu1 %v1697_v59  ;;  %v4381_v40 = vpop.permute.xlu0 %2166 }
 0x6d3   : > { %4924 = vst [vmem:[#allocation27_spill] sm:$0xff] %v4381_v40 }
 0x6d5   : > { %3370 = vmatpush3.bf16.msra.mxu1 %v1697_v59  ;;  %v4384_v59 = vpop.permute.xlu1 %2103 }
 0x6d6   : > { %3371 = vmatprep.subr.bf16.mxu1 %v1696_v61 }
 0x6d9   : > { %3372 = vmatpush3.bf16.msra.mxu1 %v1696_v61  ;;  %v4386_v61 = vpop.permute.xlu0 %1973 }
 0x6da   : > { %3373 = vmatprep.subr.bf16.mxu1 %v1695_v63  ;;  %4925 = vst [vmem:[#allocation28_spill] sm:$0xff] %v4386_v61 }
 0x6dd   : > { %3374 = vmatpush3.bf16.msra.mxu1 %v1695_v63  ;;  %v4388_v63 = vpop.permute.xlu1 %1843 }
 0x6de   : > { %3375 = vmatprep.subr.bf16.mxu1 %v1694_v5  ;;  %4926 = vst [vmem:[#allocation29_spill] sm:$0xff] %v4388_v63 }
 0x6e1   : > { %3376 = vmatpush3.bf16.msra.mxu1 %v1694_v5  ;;  %v4390_v5 = vpop.permute.xlu0 %2233 }
 0x6e2   : > { %3377 = vmatprep.subr.bf16.mxu1 %v1693_v38  ;;  %4927 = vst [vmem:[#allocation30_spill] sm:$0xff] %v4390_v5 }
 0x6e5   : > { %3378 = vmatpush3.bf16.msra.mxu1 %v1693_v38  ;;  %v4392_v38 = vpop.permute.xlu1 %2040 }
 0x6e6   : > { %4928 = vst [vmem:[#allocation31_spill] sm:$0xff] %v4392_v38 }
 0x6e8   : > { %3380 = vmatmul.mubr.bf16.vlgmr.msra.gmra.mxu1 %v3555_v48  ;;  %v4394_v48 = vpop.permute.xlu0 %1910 }
 0x6e9   : > { %3383 = vmatprep.mubr.bf16.mxu1 %v3556_v35  ;;  %4929 = vst [vmem:[#allocation32_spill] sm:$0xff] %v4394_v48  ;;  %v4396_v35 = vpop.permute.xlu1 %2300 }
 0x6ea   : > { %4930 = vst [vmem:[#allocation33_spill] sm:$0xff] %v4396_v35 }
 0x6f0   : > { %3384 = vmatmul.mubr.bf16.gmra.mxu1 %v3557_v51  ;;  %v4398_v51 = vpop.permute.xlu0 %2170 }
 0x6f1   : > { %3387 = vmatprep.mubr.bf16.mxu1 %v3558_v0  ;;  %v4400_v0 = vpop.permute.xlu1 %2107 }
 0x6f2   : > { %4931 = vst [vmem:[#allocation34_spill] sm:$0xff] %v4400_v0 }
 0x6f8   : > { %3388 = vmatmul.mubr.bf16.gmra.mxu1 %v3559_v52  ;;  %v4402_v52 = vpop.permute.xlu0 %1977 }
 0x6f9   : > { %3391 = vmatprep.mubr.bf16.mxu1 %v3560_v4  ;;  %4932 = vst [vmem:[#allocation35_spill] sm:$0xff] %v4402_v52  ;;  %v4404_v4 = vpop.permute.xlu1 %1847 }
 0x6fa   : > { %4933 = vst [vmem:[#allocation36_spill] sm:$0xff] %v4404_v4 }
 0x6fd   : > { %v4408_v40 = vpop.permute.xlu1 %2044 }
 0x6fe   : > { %4934 = vst [vmem:[#allocation37_spill] sm:$0xff] %v4408_v40 }
 0x700   : > { %3392 = vmatmul.mubr.bf16.gmra.mxu1 %v3561_v41  ;;  %v4406_v41 = vpop.permute.xlu0 %2237 }
 0x701   : > { %v4412_v5 = vpop.permute.xlu1 %2304 }
 0x704   : > { %v4410_v63 = vpop.permute.xlu0 %1914 }
 0x705   : > { %4935 = vst [vmem:[#allocation38_spill] sm:$0xff] %v4410_v63  ;;  %v4416_v48 = vpop.permute.xlu1 %2111 }
 0x706   : > { %4937 = vst [vmem:[#allocation40_spill] sm:$0xff] %v4416_v48 }
 0x708   : > { %v4414_v37 = vpop.permute.xlu0 %2174 }
 0x709   : > { %4936 = vst [vmem:[#allocation39_spill] sm:$0xff] %v4414_v37  ;;  %v4420_v7 = vpop.permute.xlu1 %1851 }
 0x70a   : > { %4939 = vst [vmem:[#allocation42_spill] sm:$0xff] %v4420_v7 }
 0x70c   : > { %v4418_v35 = vpop.permute.xlu0 %1981 }
 0x70d   : > { %4938 = vst [vmem:[#allocation41_spill] sm:$0xff] %v4418_v35  ;;  %v4424_v52 = vpop.permute.xlu1 %2048 }
 0x70e   : > { %4941 = vst [vmem:[#allocation44_spill] sm:$0xff] %v4424_v52 }
 0x710   : > { %v4422_v10 = vpop.permute.xlu0 %2241 }
 0x711   : > { %4940 = vst [vmem:[#allocation43_spill] sm:$0xff] %v4422_v10  ;;  %v4428_v58 = vpop.permute.xlu1 %2308 }
 0x712   : > { %4943 = vst [vmem:[#allocation46_spill] sm:$0xff] %v4428_v58 }
 0x714   : > { %v4426_v4 = vpop.permute.xlu0 %1918 }
 0x715   : > { %4942 = vst [vmem:[#allocation45_spill] sm:$0xff] %v4426_v4  ;;  %v4432_v63 = vpop.permute.xlu1 %2115 }
 0x716   : > { %4945 = vst [vmem:[#allocation48_spill] sm:$0xff] %v4432_v63  ;;  %v3775_v63 = vmov 0.0  }
 0x717   : > { %3395 = vmatprep.subr.bf16.mxu0 %v3775_v63  ;;  %3411 = vmatprep.mubr.msk.bf16.mxu0 %vm3776_vm2, %v3775_v63 }
 0x718   : > { %v4430_v40 = vpop.permute.xlu0 %2178 }
 0x719   : > { %4944 = vst [vmem:[#allocation47_spill] sm:$0xff] %v4430_v40  ;;  %v4436_v37 = vpop.permute.xlu1 %1855  ;;  %v3547_v40 = vld [vmem:[#allocation10 + $0x38] sm:$0xff]  }
 0x71a   : > { %4947 = vst [vmem:[#allocation50_spill] sm:$0xff] %v4436_v37  ;;  %3396 = vmatpush3.bf16.msra.mxu0 %v3547_v40  ;;  %v3551_v40 = vld [vmem:[#allocation10 + $0x18] sm:$0xff]  }
 0x71b   : > { %3397 = vmatprep.subr.bf16.mxu0 %v3775_v63 }
 0x71c   : > { %v4434_v53 = vpop.permute.xlu0 %1985 }
 0x71d   : > { %4946 = vst [vmem:[#allocation49_spill] sm:$0xff] %v4434_v53  ;;  %v4440_v35 = vpop.permute.xlu1 %2052 }
 0x71e   : > { %4949 = vst [vmem:[#allocation52_spill] sm:$0xff] %v4440_v35 }
 0x720   : > { %v4438_v48 = vpop.permute.xlu0 %2245 }
 0x721   : > { %4948 = vst [vmem:[#allocation51_spill] sm:$0xff] %v4438_v48  ;;  %v4444_v10 = vpop.permute.xlu1 %2312  ;;  %v3548_v48 = vld [vmem:[#allocation10 + $0x30] sm:$0xff]  }
 0x722   : > { %4951 = vst [vmem:[#allocation54_spill] sm:$0xff] %v4444_v10  ;;  %3398 = vmatpush3.bf16.msra.mxu0 %v3548_v48 }
 0x723   : > { %3399 = vmatprep.subr.bf16.mxu0 %v3775_v63 }
 0x724   : > { %v4442_v7 = vpop.permute.xlu0 %1922 }
 0x725   : > { %4950 = vst [vmem:[#allocation53_spill] sm:$0xff] %v4442_v7  ;;  %v4448_v4 = vpop.permute.xlu1 %2119  ;;  %v3549_v7 = vld [vmem:[#allocation10 + $0x28] sm:$0xff]  }
 0x726   : > { %4953 = vst [vmem:[#allocation56_spill] sm:$0xff] %v4448_v4  ;;  %3400 = vmatpush3.bf16.msra.mxu0 %v3549_v7 }
 0x727   : > { %3401 = vmatprep.subr.bf16.mxu0 %v3775_v63 }
 0x728   : > { %v4446_v52 = vpop.permute.xlu0 %2182 }
 0x729   : > { %4952 = vst [vmem:[#allocation55_spill] sm:$0xff] %v4446_v52  ;;  %v4452_v53 = vpop.permute.xlu1 %1859 }
 0x72a   : > { %4955 = vst [vmem:[#allocation58_spill] sm:$0xff] %v4452_v53 }
 0x72c   : > { %v4450_v58 = vpop.permute.xlu0 %1989 }
 0x72d   : > { %4954 = vst [vmem:[#allocation57_spill] sm:$0xff] %v4450_v58  ;;  %v4456_v52 = vpop.permute.xlu1 %2056  ;;  %v3550_v58 = vld [vmem:[#allocation10 + $0x20] sm:$0xff]  }
 0x72e   : > { %4957 = vst [vmem:[#allocation60_spill] sm:$0xff] %v4456_v52  ;;  %3402 = vmatpush3.bf16.msra.mxu0 %v3550_v58  ;;  %v3553_v52 = vld [vmem:[#allocation10 + $0x8] sm:$0xff]  }
 0x72f   : > { %3403 = vmatprep.subr.bf16.mxu0 %v3775_v63 }
 0x730   : > { %v4454_v37 = vpop.permute.xlu0 %2249 }
 0x731   : > { %4956 = vst [vmem:[#allocation59_spill] sm:$0xff] %v4454_v37  ;;  %v4460_v4 = vpop.permute.xlu1 %2316  ;;  %v3552_v37 = vld [vmem:[#allocation10 + $0x10] sm:$0xff]  }
 0x732   : > { %4959 = vst [vmem:[#allocation62_spill] sm:$0xff] %v4460_v4  ;;  %3404 = vmatpush3.bf16.msra.mxu0 %v3551_v40 }
 0x733   : > { %3405 = vmatprep.subr.bf16.mxu0 %v3775_v63 }
 0x734   : > { %v4458_v10 = vpop.permute.xlu0 %1926 }
 0x735   : > { %4958 = vst [vmem:[#allocation61_spill] sm:$0xff] %v4458_v10  ;;  %v4464_v48 = vpop.permute.xlu1 %2123  ;;  %v3554_v10 = vld [vmem:[#allocation10] sm:$0xff]  }
 0x736   : > { %4961 = vst [vmem:[#allocation64_spill] sm:$0xff] %v4464_v48  ;;  %3406 = vmatpush3.bf16.msra.mxu0 %v3552_v37 }
 0x737   : > { %3407 = vmatprep.subr.bf16.mxu0 %v3775_v63 }
 0x738   : > { %v4462_v53 = vpop.permute.xlu0 %2186 }
 0x739   : > { %4960 = vst [vmem:[#allocation63_spill] sm:$0xff] %v4462_v53  ;;  %v4468_v7 = vpop.permute.xlu1 %1863 }
 0x73a   : > { %4963 = vst [vmem:[#allocation66_spill] sm:$0xff] %v4468_v7  ;;  %3408 = vmatpush3.bf16.msra.mxu0 %v3553_v52 }
 0x73b   : > { %3409 = vmatprep.subr.bf16.mxu0 %v3775_v63 }
 0x73c   : > { %v4466_v35 = vpop.permute.xlu0 %1993 }
 0x73d   : > { %4962 = vst [vmem:[#allocation65_spill] sm:$0xff] %v4466_v35  ;;  %v4472_v58 = vpop.permute.xlu1 %2060 }
 0x73e   : > { %3410 = vmatpush3.bf16.msra.mxu0 %v3554_v10  ;;  %4965 = vst [vmem:[#allocation68_spill] sm:$0xff] %v4472_v58 }
 0x740   : > { %v4470_v4 = vpop.permute.xlu0 %2253 }
 0x741   : > { %4964 = vst [vmem:[#allocation67_spill] sm:$0xff] %v4470_v4  ;;  %v4476_v53 = vpop.permute.xlu1 %2320 }
 0x742   : > { %4967 = vst [vmem:[#allocation70_spill] sm:$0xff] %v4476_v53 }
 0x744   : > { %v4474_v40 = vpop.permute.xlu0 %1930 }
 0x745   : > { %4966 = vst [vmem:[#allocation69_spill] sm:$0xff] %v4474_v40  ;;  %v4480_v35 = vpop.permute.xlu1 %2127  ;;  %v4499_v40 = vld [vmem:[%s4878_s10] ss:$0 sm:$0xff] }
 0x746   : > { %4969 = vst [vmem:[#allocation72_spill] sm:$0xff] %v4480_v35  ;;  %4977 = vst [vmem:[#allocation80_spill] sm:$0xff] %v4499_v40 }
 0x748   : > { %v4478_v48 = vpop.permute.xlu0 %2190 }
 0x749   : > { %4968 = vst [vmem:[#allocation71_spill] sm:$0xff] %v4478_v48  ;;  %v4484_v0 = vpop.permute.xlu1 %1867 }
 0x74a   : > { %4971 = vst [vmem:[#allocation74_spill] sm:$0xff] %v4484_v0 }
 0x74c   : > { %v4482_v37 = vpop.permute.xlu0 %1997 }
 0x74d   : > { %4970 = vst [vmem:[#allocation73_spill] sm:$0xff] %v4482_v37  ;;  %v4488_v7 = vpop.permute.xlu1 %2064 }
 0x74e   : > { %4973 = vst [vmem:[#allocation76_spill] sm:$0xff] %v4488_v7 }
 0x750   : > { %v4486_v52 = vpop.permute.xlu0 %2257 }
 0x751   : > { %4972 = vst [vmem:[#allocation75_spill] sm:$0xff] %v4486_v52  ;;  %v4492_v10 = vpop.permute.xlu1 %2324 }
 0x752   : > { %4975 = vst [vmem:[#allocation78_spill] sm:$0xff] %v4492_v10 }
 0x754   : > { %v4490_v63 = vpop.permute.xlu0 %1934 }
 0x755   : > { %4974 = vst [vmem:[#allocation77_spill] sm:$0xff] %v4490_v63  ;;  %v4501_v48 = vpop.permute.xlu1 %2131 }
 0x756   : > { %4978 = vst [vmem:[#allocation81_spill] sm:$0xff] %v4501_v48 }
 0x758   : > { %v4494_v58 = vpop.permute.xlu0 %2194 }
 0x759   : > { %4976 = vst [vmem:[#allocation79_spill] sm:$0xff] %v4494_v58  ;;  %v4515_v55 = vpop.permute.xlu1 %1871 }
 0x75a   : > { %4980 = vst [vmem:[#allocation83_spill] sm:$0xff] %v4515_v55 }
 0x75c   : > { %v4504_v52 = vpop.permute.xlu0 %2001 }
 0x75d   : > { %4979 = vst [vmem:[#allocation82_spill] sm:$0xff] %v4504_v52 }
 0x760   : > { %v4521_v36 = vpop.permute.xlu0 %2261 }
 0x761   : > { %4981 = vst [vmem:[#allocation84_spill] sm:$0xff] %v4521_v36 }
 0x764   : > { %v4567_v36 = vpop.permute.xlu0 %1938 }
 0x765   : > { %4990 = vst [vmem:[#allocation93_spill] sm:$0xff] %v4567_v36 }
 0x7a8   : > { %v3381_v35 = vpop.f32.mrf.mxu1 }
 0x7a9   : > { %v1751_v37 = vadd.f32 %v3381_v35, %v4499_v40 }
 0x7aa   : > { %v1742_v0 = vpop.f32.mrf.mxu1 }
 0x7ab   : > { %v1743_v63 = vadd.f32 %v4499_v40, %v1742_v0  ;;  %v2344_v10 = vadd.f32 %v4261_v16, %v1751_v37  ;;  %v2360_v58 = vadd.f32 %v4259_v15, %v1751_v37  ;;  %v2376_v53 = vadd.f32 %v4273_v20, %v1751_v37 }
 0x7ac   : > { %v3382_v7 = vpop.f32.mrf.mxu1  ;;  %v2392_v61 = vadd.f32 %v4283_v24, %v1751_v37  ;;  %v2408_v48 = vadd.f32 %v4295_v27, %v1751_v37  ;;  %v2424_v35 = vadd.f32 %v4313_v60, %v1751_v37  ;;  %v2440_v52 = vadd.f32 %v4335_v6, %v1751_v37 }
 0x7ad   : > { %v1754_v4 = vadd.f32 %v3382_v7, %v4499_v40  ;;  %v2456_v0 = vadd.f32 %v4341_v42, %v1751_v37  ;;  %v2342_v16 = vadd.f32 %v4243_v9, %v1743_v63  ;;  %v2358_v15 = vadd.f32 %v4241_v8, %v1743_v63 }
 0x7ae   : > { %v1745_v38 = vpop.f32.mrf.mxu1  ;;  %v2374_v20 = vadd.f32 %v4255_v14, %v1743_v63  ;;  %v2390_v24 = vadd.f32 %v4267_v18, %v1743_v63  ;;  %v2406_v27 = vadd.f32 %v4271_v19, %v1743_v63  ;;  %v2422_v60 = vadd.f32 %v4291_v26, %v1743_v63 }
 0x7af   : > { %v2438_v6 = vadd.f32 %v4303_v45, %v1743_v63  ;;  %v2454_v55 = vadd.f32 %v4323_v33, %v1743_v63  ;;  %v4529_v42 = vadd.f32 %v4277_v21, %v1754_v4  ;;  %v4532_v8 = vadd.f32 %v4285_v25, %v1754_v4  ;;  %v4561_v63 = vpop.permute.xlu1 %2068 }
 0x7b0   : > { %v3385_v7 = vpop.f32.mrf.mxu1  ;;  %v4535_v9 = vadd.f32 %v4297_v28, %v1754_v4  ;;  %v4538_v18 = vadd.f32 %v4316_v32, %v1754_v4  ;;  %v4541_v19 = vadd.f32 %v4327_v62, %v1754_v4  ;;  %v4544_v26 = vadd.f32 %v4343_v43, %v1754_v4  ;;  %4989 = vst [vmem:[#allocation92_spill] sm:$0xff] %v4561_v63 }
 0x7b1   : > { %v1746_v45 = vadd.f32 %v4499_v40, %v1745_v38  ;;  %v4548_v21 = vadd.f32 %v4351_v3, %v1754_v4  ;;  %v4551_v25 = vadd.f32 %v4357_v39, %v1754_v4  ;;  %v1767_v28 = vadd.f32 %v3385_v7, %v4499_v40 }
 0x7b2   : > { %4982 = vst [vmem:[#allocation85_spill] sm:$0xff] %v4535_v9  ;;  %v1758_v14 = vpop.f32.mrf.mxu1  ;;  %4983 = vst [vmem:[#allocation86_spill] sm:$0xff] %v4538_v18 }
 0x7b3   : > { %4984 = vst [vmem:[#allocation87_spill] sm:$0xff] %v4541_v19  ;;  %4985 = vst [vmem:[#allocation88_spill] sm:$0xff] %v4544_v26  ;;  %v1759_v33 = vadd.f32 %v4499_v40, %v1758_v14  ;;  %v2343_v62 = vadd.f32 %v4249_v12, %v1746_v45  ;;  %v2359_v37 = vadd.f32 %v4247_v11, %v1746_v45 }
 0x7b4   : > { %4986 = vst [vmem:[#allocation89_spill] sm:$0xff] %v4548_v21  ;;  %4987 = vst [vmem:[#allocation90_spill] sm:$0xff] %v4551_v25  ;;  %v4555_v32 = vpop.f32.mrf.mxu1  ;;  %v2375_v43 = vadd.f32 %v4253_v13, %v1746_v45  ;;  %v2391_v38 = vadd.f32 %v4265_v17, %v1746_v45  ;;  %v2407_v3 = vadd.f32 %v4279_v23, %v1746_v45 }
 0x7b5   : > { %4988 = vst [vmem:[#allocation91_spill] sm:$0xff] %v4555_v32  ;;  %v2423_v39 = vadd.f32 %v4289_v22, %v1746_v45  ;;  %v2439_v4 = vadd.f32 %v4301_v29, %v1746_v45  ;;  %v2455_v7 = vadd.f32 %v4321_v46, %v1746_v45  ;;  %v2470_v12 = vmax.f32 %v2342_v16, %v2343_v62 }
 0x7b6   : > { %v1761_v14 = vpop.f32.mrf.mxu1  ;;  %v2491_v32 = vmax.f32 %v2358_v15, %v2359_v37  ;;  %v2512_v11 = vmax.f32 %v2374_v20, %v2375_v43  ;;  %v2533_v40 = vmax.f32 %v2390_v24, %v2391_v38  ;;  %v2554_v13 = vmax.f32 %v2406_v27, %v2407_v3 }
 0x7b7   : > { %v2575_v25 = vmax.f32 %v2422_v60, %v2423_v39  ;;  %v2596_v17 = vmax.f32 %v2438_v6, %v2439_v4  ;;  %v2617_v21 = vmax.f32 %v2454_v55, %v2455_v7  ;;  %v2471_v26 = vmax.f32 %v2470_v12, %v2344_v10 }
 0x7b8   : > { %v3389_v63 = vpop.f32.mrf.mxu1  ;;  %v2492_v23 = vmax.f32 %v2491_v32, %v2360_v58  ;;  %v2513_v19 = vmax.f32 %v2512_v11, %v2376_v53  ;;  %v2534_v22 = vmax.f32 %v2533_v40, %v2392_v61  ;;  %v2555_v18 = vmax.f32 %v2554_v13, %v2408_v48  ;;  %v4581_v58 = vpop.permute.xlu1 %2328 }
 0x7b9   : > { %v2576_v29 = vmax.f32 %v2575_v25, %v2424_v35  ;;  %v2597_v9 = vmax.f32 %v2596_v17, %v2440_v52  ;;  %v2618_v46 = vmax.f32 %v2617_v21, %v2456_v0  ;;  %v4570_v36 = vadd.f32 %v4349_v1, %v1767_v28  ;;  %v4999_v17 = vld [vmem:[#allocation25_spill] sm:$0xff] }
 0x7ba   : > { %v1774_v45 = vpop.f32.mrf.mxu1  ;;  %v4573_v16 = vadd.f32 %v4355_v49, %v1767_v28  ;;  %v4576_v15 = vadd.f32 %v4365_v50, %v1767_v28  ;;  %v4579_v55 = vadd.f32 %v4373_v54, %v1767_v28  ;;  %v4584_v53 = vadd.f32 %v4384_v59, %v1767_v28  ;;  %v4595_v50 = vpop.permute.xlu0 %2198 }
 0x7bb   : > { %v4587_v61 = vadd.f32 %v4398_v51, %v1767_v28  ;;  %v4590_v1 = vadd.f32 %v4406_v41, %v1767_v28  ;;  %v4593_v49 = vadd.f32 %v4412_v5, %v1767_v28  ;;  %v2346_v54 = vadd.f32 %v4309_v31, %v1759_v33  ;;  %v4991_v31 = vld [vmem:[#allocation85_spill] sm:$0xff] }
 0x7bc   : > { %v3390_v48 = vpop.f32.mrf.mxu1  ;;  %v2362_v40 = vadd.f32 %v4307_v30, %v1759_v33  ;;  %v2378_v52 = vadd.f32 %v4330_v34, %v1759_v33  ;;  %v2394_v59 = vadd.f32 %v4337_v56, %v1759_v33  ;;  %v2410_v51 = vadd.f32 %v4345_v44, %v1759_v33  ;;  %v4992_v30 = vld [vmem:[#allocation86_spill] sm:$0xff]  ;;  %v4993_v34 = vld [vmem:[#allocation87_spill] sm:$0xff]  ;;  %v4994_v56 = vld [vmem:[#allocation88_spill] sm:$0xff] }
 0x7bd   : > { %v2426_v10 = vadd.f32 %v4359_v47, %v1759_v33  ;;  %v2442_v41 = vadd.f32 %v4371_v2, %v1759_v33  ;;  %v2458_v5 = vadd.f32 %v4379_v57, %v1759_v33  ;;  %v2472_v0 = vmax.f32 %v2471_v26, %v4529_v42  ;;  %v4995_v44 = vld [vmem:[#allocation89_spill] sm:$0xff]  ;;  %v4996_v47 = vld [vmem:[#allocation90_spill] sm:$0xff]  ;;  %v4613_v42 = vpop.permute.xlu1 %2135  ;;  %v4998_v38 = vld [vmem:[#allocation91_spill] sm:$0xff] }
 0x7be   : > { %v1777_v35 = vpop.f32.mrf.mxu1  ;;  %v2493_v20 = vmax.f32 %v2492_v23, %v4532_v8  ;;  %v2514_v24 = vmax.f32 %v2513_v19, %v4991_v31  ;;  %v2535_v27 = vmax.f32 %v2534_v22, %v4992_v30  ;;  %v2556_v60 = vmax.f32 %v2555_v18, %v4993_v34  ;;  %v4615_v43 = vpop.permute.xlu0 %2005  ;;  %v4997_v18 = vld [vmem:[#allocation80_spill] sm:$0xff]  ;;  %v5000_v22 = vld [vmem:[#allocation26_spill] sm:$0xff]  ;;  %v5010_v30 = vld [vmem:[#allocation23_spill] sm:$0xff] }
 0x7bf   : > { %v2577_v6 = vmax.f32 %v2576_v29, %v4994_v56  ;;  %v2598_v21 = vmax.f32 %v2597_v9, %v4995_v44  ;;  %v2619_v25 = vmax.f32 %v2618_v46, %v4996_v47  ;;  %v2473_v28 = vmax.f32 %v2472_v0, %v2346_v54  ;;  %v5001_v29 = vld [vmem:[#allocation28_spill] sm:$0xff]  ;;  %v5002_v46 = vld [vmem:[#allocation31_spill] sm:$0xff]  ;;  %v5003_v54 = vld [vmem:[#allocation34_spill] sm:$0xff] }
 0x7c0   : > { %v3393_v2 = vpop.f32.mrf.mxu1  ;;  %v2494_v57 = vmax.f32 %v2493_v20, %v2362_v40  ;;  %v2515_v33 = vmax.f32 %v2514_v24, %v2378_v52  ;;  %v2536_v32 = vmax.f32 %v2535_v27, %v2394_v59  ;;  %v2557_v8 = vmax.f32 %v2556_v60, %v2410_v51  ;;  %v5004_v40 = vld [vmem:[#allocation39_spill] sm:$0xff]  ;;  %v5008_v0 = vld [vmem:[#allocation21_spill] sm:$0xff]  ;;  %v5009_v31 = vld [vmem:[#allocation22_spill] sm:$0xff] }
 0x7c1   : > { %v2578_v26 = vmax.f32 %v2577_v6, %v2426_v10  ;;  %v2599_v19 = vmax.f32 %v2598_v21, %v2442_v41  ;;  %v2620_v62 = vmax.f32 %v2619_v25, %v2458_v5  ;;  %v1770_v3 = vadd.f32 %v4998_v38, %v4997_v18  ;;  %v5005_v59 = vld [vmem:[#allocation43_spill] sm:$0xff]  ;;  %v5006_v10 = vld [vmem:[#allocation46_spill] sm:$0xff]  ;;  %v5007_v5 = vld [vmem:[#allocation20_spill] sm:$0xff]  ;;  %v4646_v34 = vpop.permute.xlu1 %2072 }
 0x7c2   : > { %v1790_v37 = vpop.f32.mrf.mxu1  ;;  %v1762_v9 = vadd.f32 %v4997_v18, %v1761_v14  ;;  %v1783_v39 = vadd.f32 %v3389_v63, %v4997_v18  ;;  %v1775_v4 = vadd.f32 %v4997_v18, %v1774_v45  ;;  %v4623_v7 = vadd.f32 %v3390_v48, %v4997_v18  ;;  %v5011_v60 = vld [vmem:[#allocation24_spill] sm:$0xff]  ;;  %v5012_v6 = vld [vmem:[#allocation27_spill] sm:$0xff]  ;;  %v5013_v21 = vld [vmem:[#allocation30_spill] sm:$0xff] }
 0x7c3   : > { %v4626_v12 = vadd.f32 %v4997_v18, %v1777_v35  ;;  %v4629_v11 = vadd.f32 %v3393_v2, %v4997_v18  ;;  %v4632_v13 = vadd.f32 %v4997_v18, %v1790_v37  ;;  %v2349_v23 = vadd.f32 %v4999_v17, %v1770_v3  ;;  %v5014_v25 = vld [vmem:[#allocation33_spill] sm:$0xff]  ;;  %v4652_v37 = vpop.permute.xlu0 %2265 }
 0x7c4   : > { %v2365_v14 = vadd.f32 %v5000_v22, %v1770_v3  ;;  %v2381_v63 = vadd.f32 %v5001_v29, %v1770_v3  ;;  %v2397_v45 = vadd.f32 %v5002_v46, %v1770_v3  ;;  %v2413_v48 = vadd.f32 %v5003_v54, %v1770_v3 }
 0x7c5   : > { %v2429_v52 = vadd.f32 %v5004_v40, %v1770_v3  ;;  %v2445_v51 = vadd.f32 %v5005_v59, %v1770_v3  ;;  %v2461_v41 = vadd.f32 %v5006_v10, %v1770_v3  ;;  %v2347_v35 = vadd.f32 %v5007_v5, %v1762_v9 }
 0x7c6   : > { %v2363_v20 = vadd.f32 %v5008_v0, %v1762_v9  ;;  %v2379_v24 = vadd.f32 %v5009_v31, %v1762_v9  ;;  %v2395_v27 = vadd.f32 %v5010_v30, %v1762_v9  ;;  %v2411_v56 = vadd.f32 %v5011_v60, %v1762_v9 }
 0x7c7   : > { %v2427_v44 = vadd.f32 %v5012_v6, %v1762_v9  ;;  %v2443_v47 = vadd.f32 %v5013_v21, %v1762_v9  ;;  %v2459_v2 = vadd.f32 %v5014_v25, %v1762_v9  ;;  %v2474_v38 = vmax.f32 %v2473_v28, %v2347_v35  ;;  %v5019_v35 = vld [vmem:[#allocation56_spill] sm:$0xff]  ;;  %v4680_v30 = vpop.permute.xlu0 %2202 }
 0x7c8   : > { %v2495_v3 = vmax.f32 %v2494_v57, %v2363_v20  ;;  %v2516_v17 = vmax.f32 %v2515_v33, %v2379_v24  ;;  %v2537_v22 = vmax.f32 %v2536_v32, %v2395_v27  ;;  %v2558_v29 = vmax.f32 %v2557_v8, %v2411_v56  ;;  %v5015_v33 = vld [vmem:[#allocation42_spill] sm:$0xff]  ;;  %v5016_v8 = vld [vmem:[#allocation45_spill] sm:$0xff]  ;;  %v5024_v56 = vld [vmem:[#allocation32_spill] sm:$0xff] }
 0x7c9   : > { %v2579_v46 = vmax.f32 %v2578_v26, %v2427_v44  ;;  %v2600_v54 = vmax.f32 %v2599_v19, %v2443_v47  ;;  %v2621_v40 = vmax.f32 %v2620_v62, %v2459_v2  ;;  %v2475_v59 = vmax.f32 %v2474_v38, %v4570_v36  ;;  %v5017_v19 = vld [vmem:[#allocation49_spill] sm:$0xff]  ;;  %v5018_v62 = vld [vmem:[#allocation52_spill] sm:$0xff]  ;;  %v5025_v44 = vld [vmem:[#allocation35_spill] sm:$0xff] }
 0x7ca   : > { %v2496_v10 = vmax.f32 %v2495_v3, %v4573_v16  ;;  %v2517_v5 = vmax.f32 %v2516_v17, %v4576_v15  ;;  %v2538_v0 = vmax.f32 %v2537_v22, %v4579_v55  ;;  %v2559_v9 = vmax.f32 %v2558_v29, %v4584_v53  ;;  %v5020_v55 = vld [vmem:[#allocation63_spill] sm:$0xff]  ;;  %v5023_v27 = vld [vmem:[#allocation29_spill] sm:$0xff]  ;;  %v5027_v2 = vld [vmem:[#allocation40_spill] sm:$0xff] }
 0x7cb   : > { %v2580_v31 = vmax.f32 %v2579_v46, %v4587_v61  ;;  %v2601_v28 = vmax.f32 %v2600_v54, %v4590_v1  ;;  %v2622_v57 = vmax.f32 %v2621_v40, %v4593_v49  ;;  %v2352_v32 = vadd.f32 %v5015_v33, %v1783_v39  ;;  %v5021_v53 = vld [vmem:[#allocation67_spill] sm:$0xff]  ;;  %v5022_v1 = vld [vmem:[#allocation70_spill] sm:$0xff]  ;;  %v4678_v49 = vpop.permute.xlu1 %2332  ;;  %v5026_v47 = vld [vmem:[#allocation37_spill] sm:$0xff] }
 0x7cc   : > { %v2368_v26 = vadd.f32 %v5016_v8, %v1783_v39  ;;  %v2384_v36 = vadd.f32 %v5017_v19, %v1783_v39  ;;  %v2400_v16 = vadd.f32 %v5018_v62, %v1783_v39  ;;  %v4667_v15 = vadd.f32 %v5019_v35, %v1783_v39  ;;  %v5028_v3 = vld [vmem:[#allocation47_spill] sm:$0xff] }
 0x7cd   : > { %v4670_v20 = vadd.f32 %v5020_v55, %v1783_v39  ;;  %v4673_v61 = vadd.f32 %v5021_v53, %v1783_v39  ;;  %v4676_v24 = vadd.f32 %v5022_v1, %v1783_v39  ;;  %v2350_v60 = vadd.f32 %v5023_v27, %v1775_v4  ;;  %v5029_v22 = vld [vmem:[#allocation51_spill] sm:$0xff]  ;;  %v5030_v39 = vld [vmem:[#allocation54_spill] sm:$0xff] }
 0x7ce   : > { %v2366_v6 = vadd.f32 %v5024_v56, %v1775_v4  ;;  %v2382_v21 = vadd.f32 %v5025_v44, %v1775_v4  ;;  %v2398_v25 = vadd.f32 %v5026_v47, %v1775_v4  ;;  %v2414_v38 = vadd.f32 %v5027_v2, %v1775_v4 }
 0x7cf   : > { %v2430_v17 = vadd.f32 %v5028_v3, %v1775_v4  ;;  %v2446_v29 = vadd.f32 %v5029_v22, %v1775_v4  ;;  %v2462_v46 = vadd.f32 %v5030_v39, %v1775_v4  ;;  %v2476_v54 = vmax.f32 %v2475_v59, %v2349_v23  ;;  %v4694_v22 = vpop.permute.xlu1 %2269  ;;  %v5031_v4 = vld [vmem:[#allocation50_spill] sm:$0xff]  ;;  %v5035_v59 = vld [vmem:[#allocation64_spill] sm:$0xff] }
 0x7d0   : > { %v2497_v40 = vmax.f32 %v2496_v10, %v2365_v14  ;;  %v2518_v33 = vmax.f32 %v2517_v5, %v2381_v63  ;;  %v2539_v8 = vmax.f32 %v2538_v0, %v2397_v45  ;;  %v2560_v19 = vmax.f32 %v2559_v9, %v2413_v48  ;;  %v5032_v14 = vld [vmem:[#allocation53_spill] sm:$0xff]  ;;  %v5036_v5 = vld [vmem:[#allocation71_spill] sm:$0xff] }
 0x7d1   : > { %v2581_v62 = vmax.f32 %v2580_v31, %v2429_v52  ;;  %v2602_v35 = vmax.f32 %v2601_v28, %v2445_v51  ;;  %v2623_v55 = vmax.f32 %v2622_v57, %v2461_v41  ;;  %v2477_v53 = vmax.f32 %v2476_v54, %v2350_v60  ;;  %v5033_v45 = vld [vmem:[#allocation57_spill] sm:$0xff]  ;;  %v5034_v52 = vld [vmem:[#allocation60_spill] sm:$0xff]  ;;  %v4704_v41 = vpop.permute.xlu0 %2139  ;;  %v5037_v9 = vld [vmem:[#allocation75_spill] sm:$0xff] }
 0x7d2   : > { %v2498_v1 = vmax.f32 %v2497_v40, %v2366_v6  ;;  %v2519_v27 = vmax.f32 %v2518_v33, %v2382_v21  ;;  %v2540_v56 = vmax.f32 %v2539_v8, %v2398_v25  ;;  %v2561_v44 = vmax.f32 %v2560_v19, %v2414_v38  ;;  %v5038_v28 = vld [vmem:[#allocation78_spill] sm:$0xff]  ;;  %v5039_v60 = vld [vmem:[#allocation36_spill] sm:$0xff]  ;;  %v5041_v38 = vld [vmem:[#allocation41_spill] sm:$0xff] }
 0x7d3   : > { %v2582_v47 = vmax.f32 %v2581_v62, %v2430_v17  ;;  %v4690_v2 = vmax.f32 %v2602_v35, %v2446_v29  ;;  %v4692_v3 = vmax.f32 %v2623_v55, %v2462_v46  ;;  %v2353_v23 = vadd.f32 %v5031_v4, %v4623_v7  ;;  %v5040_v21 = vld [vmem:[#allocation38_spill] sm:$0xff]  ;;  %v5042_v29 = vld [vmem:[#allocation44_spill] sm:$0xff]  ;;  %v5044_v40 = vld [vmem:[#allocation55_spill] sm:$0xff] }
 0x7d4   : > { %v2369_v63 = vadd.f32 %v5032_v14, %v4623_v7  ;;  %v2385_v48 = vadd.f32 %v5033_v45, %v4623_v7  ;;  %v2401_v51 = vadd.f32 %v5034_v52, %v4623_v7  ;;  %v2417_v10 = vadd.f32 %v5035_v59, %v4623_v7  ;;  %v5043_v46 = vld [vmem:[#allocation48_spill] sm:$0xff]  ;;  %v5046_v19 = vld [vmem:[#allocation62_spill] sm:$0xff] }
 0x7d5   : > { %v4710_v0 = vadd.f32 %v5036_v5, %v4623_v7  ;;  %v4714_v31 = vadd.f32 %v5037_v9, %v4623_v7  ;;  %v4718_v57 = vadd.f32 %v5038_v28, %v4623_v7  ;;  %v2351_v6 = vadd.f32 %v5039_v60, %v4626_v12  ;;  %v5045_v7 = vld [vmem:[#allocation59_spill] sm:$0xff]  ;;  %v2337_v9 = vpop.permute.xlu1 %2336  ;;  %v3394_v28 = vpop.f32.mrf.mxu1 }
 0x7d6   : > { %v2367_v25 = vadd.f32 %v5040_v21, %v4626_v12  ;;  %v2383_v17 = vadd.f32 %v5041_v38, %v4626_v12  ;;  %v2399_v39 = vadd.f32 %v5042_v29, %v4626_v12  ;;  %v2415_v54 = vadd.f32 %v5043_v46, %v4626_v12  ;;  %v5053_v46 = vld [vmem:[#allocation65_spill] sm:$0xff] }
 0x7d7   : > { %v2431_v33 = vadd.f32 %v5044_v40, %v4626_v12  ;;  %v4734_v8 = vadd.f32 %v5045_v7, %v4626_v12  ;;  %v4738_v62 = vadd.f32 %v5046_v19, %v4626_v12  ;;  %v2478_v35 = vmax.f32 %v2477_v53, %v2351_v6  ;;  %v2207_v12 = vpop.permute.xlu0 %2206  ;;  %v5049_v6 = vld [vmem:[#allocation82_spill] sm:$0xff]  ;;  %v5054_v40 = vld [vmem:[#allocation68_spill] sm:$0xff]  ;;  %v1793_v7 = vpop.f32.mrf.mxu1 }
 0x7d8   : > { %v2499_v55 = vmax.f32 %v2498_v1, %v2367_v25  ;;  %v2520_v4 = vmax.f32 %v2519_v27, %v2383_v17  ;;  %v2541_v14 = vmax.f32 %v2540_v56, %v2399_v39  ;;  %v2562_v45 = vmax.f32 %v2561_v44, %v2415_v54  ;;  %v5047_v27 = vld [vmem:[#allocation74_spill] sm:$0xff]  ;;  %v5048_v44 = vld [vmem:[#allocation77_spill] sm:$0xff]  ;;  %v5055_v19 = vld [vmem:[#allocation72_spill] sm:$0xff] }
 0x7d9   : > { %v2583_v52 = vmax.f32 %v2582_v47, %v2431_v33  ;;  %v2479_v60 = vmax.f32 %v2478_v35, %v2352_v32  ;;  %v2356_v56 = vadd.f32 %v5047_v27, %v4629_v11  ;;  %v2372_v47 = vadd.f32 %v5048_v44, %v4629_v11  ;;  %v5050_v32 = vld [vmem:[#allocation92_spill] sm:$0xff]  ;;  %v5052_v17 = vld [vmem:[#allocation61_spill] sm:$0xff] }
 0x7da   : > { %v2500_v21 = vmax.f32 %v2499_v55, %v2368_v26  ;;  %v2521_v38 = vmax.f32 %v2520_v4, %v2384_v36  ;;  %v2542_v29 = vmax.f32 %v2541_v14, %v2400_v16  ;;  %v2563_v53 = vmax.f32 %v2562_v45, %v4667_v15  ;;  %v5051_v15 = vld [vmem:[#allocation58_spill] sm:$0xff]  ;;  %v5057_v4 = vld [vmem:[#allocation84_spill] sm:$0xff] }
 0x7db   : > { %v4746_v1 = vmax.f32 %v2583_v52, %v4670_v20  ;;  %v2388_v25 = vadd.f32 %v5049_v6, %v4629_v11  ;;  %v2404_v26 = vadd.f32 %v5050_v32, %v4629_v11  ;;  %v2420_v36 = vadd.f32 %v4613_v42, %v4629_v11  ;;  %v5056_v42 = vld [vmem:[#allocation79_spill] sm:$0xff] }
 0x7dc   : > { %v4759_v16 = vadd.f32 %v2337_v9, %v4629_v11  ;;  %v2354_v20 = vadd.f32 %v5051_v15, %v4632_v13  ;;  %v2370_v39 = vadd.f32 %v5052_v17, %v4632_v13  ;;  %v2386_v54 = vadd.f32 %v5053_v46, %v4632_v13  ;;  %v2341_v15 = vpop.permute.xlu1 %2340  ;;  %v2274_v17 = vpop.permute.xlu0 %2273 }
 0x7dd   : > { %v2402_v33 = vadd.f32 %v5054_v40, %v4632_v13  ;;  %v2418_v35 = vadd.f32 %v5055_v19, %v4632_v13  ;;  %v2434_v55 = vadd.f32 %v5056_v42, %v4632_v13  ;;  %v2450_v14 = vadd.f32 %v5057_v4, %v4632_v13  ;;  %v5058_v4 = vld [vmem:[#allocation83_spill] sm:$0xff] }
 0x7de   : > { %v2480_v45 = vmax.f32 %v2479_v60, %v2353_v23  ;;  %v2501_v52 = vmax.f32 %v2500_v21, %v2369_v63  ;;  %v2522_v9 = vmax.f32 %v2521_v38, %v2385_v48  ;;  %v2543_v27 = vmax.f32 %v2542_v29, %v2401_v51  ;;  %v5059_v63 = vld [vmem:[#allocation93_spill] sm:$0xff] }
 0x7df   : > { %v2564_v44 = vmax.f32 %v2563_v53, %v2417_v10  ;;  %v1802_v32 = vadd.f32 %v3394_v28, %v4997_v18  ;;  %v1794_v46 = vadd.f32 %v4997_v18, %v1793_v7  ;;  %v2436_v40 = vadd.f32 %v4680_v30, %v4629_v11  ;;  %v5060_v18 = vld [vmem:[#allocation66_spill] sm:$0xff]  ;;  %v5061_v38 = vld [vmem:[#allocation69_spill] sm:$0xff] }
 0x7e0   : > { %v2481_v6 = vmax.f32 %v2480_v45, %v2354_v20  ;;  %v2502_v19 = vmax.f32 %v2501_v52, %v2370_v39  ;;  %v2523_v42 = vmax.f32 %v2522_v9, %v2386_v54  ;;  %v2544_v5 = vmax.f32 %v2543_v27, %v2402_v33  ;;  %v5062_v29 = vld [vmem:[#allocation73_spill] sm:$0xff]  ;;  %v5063_v20 = vld [vmem:[#allocation76_spill] sm:$0xff] }
 0x7e1   : > { %v2565_v59 = vmax.f32 %v2564_v44, %v2418_v35  ;;  %v2357_v23 = vadd.f32 %v5058_v4, %v1802_v32  ;;  %v2373_v48 = vadd.f32 %v5059_v63, %v1802_v32  ;;  %v2389_v51 = vadd.f32 %v4615_v43, %v1802_v32  ;;  %v5064_v54 = vld [vmem:[#allocation81_spill] sm:$0xff] }
 0x7e2   : > { %v2405_v10 = vadd.f32 %v4646_v34, %v1802_v32  ;;  %v4783_v28 = vadd.f32 %v2341_v15, %v1802_v32  ;;  %v4785_v60 = vadd.f32 %v2274_v17, %v1802_v32  ;;  %v2355_v21 = vadd.f32 %v5060_v18, %v1794_v46 }
 0x7e3   : > { %v2371_v30 = vadd.f32 %v5061_v38, %v1794_v46  ;;  %v2387_v53 = vadd.f32 %v5062_v29, %v1794_v46  ;;  %v2403_v39 = vadd.f32 %v5063_v20, %v1794_v46  ;;  %v2419_v33 = vadd.f32 %v5064_v54, %v1794_v46 }
 0x7e4   : > { %v2435_v7 = vadd.f32 %v4595_v50, %v1794_v46  ;;  %v2482_v35 = vmax.f32 %v2481_v6, %v2355_v21  ;;  %v2421_v34 = vadd.f32 %v4704_v41, %v1802_v32  ;;  %v2437_v45 = vadd.f32 %v2207_v12, %v1802_v32 }
 0x7e5   : > { %v2503_v43 = vmax.f32 %v2502_v19, %v2371_v30  ;;  %v2524_v52 = vmax.f32 %v2523_v42, %v2387_v53  ;;  %v2545_v9 = vmax.f32 %v2544_v5, %v2403_v39  ;;  %v2451_v27 = vadd.f32 %v4652_v37, %v1794_v46 }
 0x7e6   : > { %v2452_v44 = vadd.f32 %v4694_v22, %v4629_v11  ;;  %v2483_v15 = vmax.f32 %v2482_v35, %v2356_v56  ;;  %v2466_v4 = vadd.f32 %v4581_v58, %v4632_v13  ;;  %v2467_v63 = vadd.f32 %v4678_v49, %v1794_v46 }
 0x7e7   : > { %v2504_v17 = vmax.f32 %v2503_v43, %v2372_v47  ;;  %v2525_v50 = vmax.f32 %v2524_v52, %v2388_v25  ;;  %v2546_v6 = vmax.f32 %v2545_v9, %v2404_v26  ;;  %v2566_v19 = vmax.f32 %v2565_v59, %v2419_v33 }
 0x7e8   : > { %v2585_v41 = vmax.f32 %v4746_v1, %v4710_v0  ;;  %v2484_v12 = vmax.f32 %v2483_v15, %v2357_v23  ;;  %v5065_v37 = vmax.f32 %v4690_v2, %v4734_v8  ;;  %v5066_v22 = vmax.f32 %v4692_v3, %v4738_v62 }
 0x7e9   : > { %v2505_v5 = vmax.f32 %v2504_v17, %v2373_v48  ;;  %v2526_v13 = vmax.f32 %v2525_v50, %v2389_v51  ;;  %v2547_v49 = vmax.f32 %v2546_v6, %v2405_v10  ;;  %v2567_v56 = vmax.f32 %v2566_v19, %v2420_v36 }
 0x7ea   : > { %v2605_v11 = vmax.f32 %v5065_v37, %v4673_v61  ;;  %v2626_v58 = vmax.f32 %v5066_v22, %v4676_v24  ;;  %v2586_v47 = vmax.f32 %v2585_v41, %v2434_v55  ;;  %v2485_v59 = vrot.slane %v2484_v12, 4 }
 0x7eb   : > { %v2506_v25 = vrot.slane %v2505_v5, 4  ;;  %v2527_v26 = vrot.slane %v2526_v13, 4  ;;  %v2548_v32 = vrot.slane %v2547_v49, 4  ;;  %v2568_v46 = vmax.f32 %v2567_v56, %v2421_v34 }
 0x7ec   : > { %v2606_v0 = vmax.f32 %v2605_v11, %v4714_v31  ;;  %v2627_v1 = vmax.f32 %v2626_v58, %v4718_v57  ;;  %v2587_v2 = vmax.f32 %v2586_v47, %v2435_v7  ;;  %v2486_v61 = vmax.f32 %v2484_v12, %v2485_v59 }
 0x7ed   : > { %v2507_v8 = vmax.f32 %v2505_v5, %v2506_v25  ;;  %v2528_v3 = vmax.f32 %v2526_v13, %v2527_v26  ;;  %v2549_v24 = vmax.f32 %v2547_v49, %v2548_v32  ;;  %v2569_v62 = vrot.slane %v2568_v46, 4 }
 0x7ee   : > { %v2607_v42 = vmax.f32 %v2606_v0, %v2450_v14  ;;  %v2628_v23 = vmax.f32 %v2627_v1, %v2466_v4  ;;  %v2588_v48 = vmax.f32 %v2587_v2, %v2436_v40  ;;  %v2487_v36 = vrot.slane %v2486_v61, 2 }
 0x7ef   : > { %v2508_v55 = vrot.slane %v2507_v8, 2  ;;  %v2529_v18 = vrot.slane %v2528_v3, 2  ;;  %v2550_v31 = vrot.slane %v2549_v24, 2  ;;  %v2570_v21 = vmax.f32 %v2568_v46, %v2569_v62 }
 0x7f0   : > { %v2608_v51 = vmax.f32 %v2607_v42, %v2451_v27  ;;  %v2629_v10 = vmax.f32 %v2628_v23, %v2467_v63  ;;  %v2589_v57 = vmax.f32 %v2588_v48, %v2437_v45  ;;  %v2488_v38 = vmax.f32 %v2486_v61, %v2487_v36 }
 0x7f1   : > { %v2509_v30 = vmax.f32 %v2507_v8, %v2508_v55  ;;  %v2530_v14 = vmax.f32 %v2528_v3, %v2529_v18  ;;  %v2551_v20 = vmax.f32 %v2549_v24, %v2550_v31  ;;  %v2571_v39 = vrot.slane %v2570_v21, 2 }
 0x7f2   : > { %v2609_v29 = vmax.f32 %v2608_v51, %v2452_v44  ;;  %v2630_v53 = vmax.f32 %v2629_v10, %v4759_v16  ;;  %v2590_v54 = vrot.slane %v2589_v57, 4  ;;  %v2489_v40 = vrot.slane %v2488_v38, 1 }
 0x7f3   : > { %v2510_v33 = vrot.slane %v2509_v30, 1  ;;  %v2531_v43 = vrot.slane %v2530_v14, 1  ;;  %v2552_v34 = vrot.slane %v2551_v20, 1  ;;  %v2572_v45 = vmax.f32 %v2570_v21, %v2571_v39  ;;  %v3008_v21 = vld [vmem:[%s4880_s12] ss:$0 sm:$0xff] }
 0x7f4   : > { %v2610_v7 = vmax.f32 %v2609_v29, %v4785_v60  ;;  %v2631_v35 = vmax.f32 %v2630_v53, %v4783_v28  ;;  %v2591_v52 = vmax.f32 %v2589_v57, %v2590_v54  ;;  %v2490_v9 = vmax.f32 %v2488_v38, %v2489_v40 }
 0x7f5   : > { %v2511_v27 = vmax.f32 %v2509_v30, %v2510_v33  ;;  %v2532_v16 = vmax.f32 %v2530_v14, %v2531_v43  ;;  %v2553_v17 = vmax.f32 %v2551_v20, %v2552_v34  ;;  %v2573_v4 = vrot.slane %v2572_v45, 1 }
 0x7f6   : > { %v2611_v44 = vrot.slane %v2610_v7, 4  ;;  %v2632_v15 = vrot.slane %v2631_v35, 4  ;;  %v2592_v63 = vrot.slane %v2591_v52, 2  ;;  %v2638_v19 = vpack.c.bf16 %v2490_v9, %v2490_v9 }
 0x7f7   : > { %v2639_v41 = vpack.c.bf16 %v2511_v27, %v2511_v27  ;;  %v2574_v12 = vmax.f32 %v2572_v45, %v2573_v4  ;;  %v2640_v5 = vpack.c.bf16 %v2532_v16, %v2532_v16  ;;  %v2641_v28 = vpack.c.bf16 %v2553_v17, %v2553_v17 }
 0x7f8   : > { %v2612_v50 = vmax.f32 %v2610_v7, %v2611_v44  ;;  %v2633_v6 = vmax.f32 %v2631_v35, %v2632_v15  ;;  %v2593_v60 = vmax.f32 %v2591_v52, %v2592_v63  ;;  %v2677_v22 = vunpack.c.l.b16 %v2638_v19 }
 0x7f9   : > { %v2678_v58 = vunpack.c.l.b16 %v2639_v41  ;;  %v2642_v49 = vpack.c.bf16 %v2574_v12, %v2574_v12  ;;  %v2679_v56 = vunpack.c.l.b16 %v2640_v5  ;;  %v2680_v25 = vunpack.c.l.b16 %v2641_v28 }
 0x7fa   : > { %v2613_v37 = vrot.slane %v2612_v50, 2  ;;  %v2634_v11 = vrot.slane %v2633_v6, 2  ;;  %v2594_v13 = vrot.slane %v2593_v60, 1 }
 0x7fb   : > { %v2686_v0 = vsel %vm2685_vm3, %v2678_v58, %v2677_v22  ;;  %v2681_v2 = vunpack.c.l.b16 %v2642_v49 }
 0x7fc   : > { %v2614_v47 = vmax.f32 %v2612_v50, %v2613_v37  ;;  %v2635_v59 = vmax.f32 %v2633_v6, %v2634_v11  ;;  %v2595_v1 = vmax.f32 %v2593_v60, %v2594_v13  ;;  %v2688_v26 = vsel %vm2687_vm4, %v2679_v56, %v2686_v0 }
 0x7fd   : > { %v2690_v61 = vsel %vm2689_vm5, %v2680_v25, %v2688_v26 }
 0x7fe   : > { %v2615_v32 = vrot.slane %v2614_v47, 1  ;;  %v2636_v46 = vrot.slane %v2635_v59, 1  ;;  %v2643_v8 = vpack.c.bf16 %v2595_v1, %v2595_v1  ;;  %v2692_v3 = vsel %vm2691_vm6, %v2681_v2, %v2690_v61 }
 0x800   : > { %v2616_v42 = vmax.f32 %v2614_v47, %v2615_v32  ;;  %v2637_v23 = vmax.f32 %v2635_v59, %v2636_v46  ;;  %v2682_v24 = vunpack.c.l.b16 %v2643_v8 }
 0x802   : > { %v2644_v62 = vpack.c.bf16 %v2616_v42, %v2616_v42  ;;  %v2645_v48 = vpack.c.bf16 %v2637_v23, %v2637_v23  ;;  %v2694_v36 = vsel %vm2693_vm7, %v2682_v24, %v2692_v3 }
 0x804   : > { %v2683_v55 = vunpack.c.l.b16 %v2644_v62  ;;  %v2684_v51 = vunpack.c.l.b16 %v2645_v48 }
 0x806   : > { %v2696_v10 = vsel %vm2695_vm8, %v2683_v55, %v2694_v36 }
 0x807   : > { %v2698_v18 = vsel %vm2697_vm9, %v2684_v51, %v2696_v10 }
 0x808   : > { %v2699_v31 = vpack.c.b16 %v2698_v18, %v2698_v18 }
 0x80a   : > { %3412 = vmatmul.mubr.bf16.vlgmr.msra.gmra.mxu0 %v2699_v31 }
 0x8ca   : > { %v2783_v57 = vpop.f32.mrf.mxu0 }
 0x8cb   : > { %v2784_v38 = vadd.f32 %v3008_v21, %v2783_v57 }
 0x8cc   : > { %v3413_v30 = vpop.f32.mrf.mxu0 }
 0x8cd   : > { %2789 = vst [vmem:[%s543_s17] sm:$0xff] %v2784_v38 }
 0x8ce   : > { %v2786_v29 = vpop.f32.mrf.mxu0 }
 0x8cf   : > { %3707 = shalt.err (!%p3704_p7)
}
 0x8d0   : > { %s3708_s9 = scalar_lea.hbm %s4826_s23, 128  ;;  %s3712_s15 = scalar_lea.hbm %s4881_s13, 512 }
 0x8d1   : > { %p3709_p1 = scmp.ne.s32.totalorder %s4826_s23, %s3708_s9  ;;  %p3713_p12 = scmp.lt.s32.totalorder %s4826_s23, %s4881_s13 }
 0x8d2   : > { %p3714_p13 = scmp.lt.s32.totalorder %s3712_s15, %s3708_s9 }
 0x8d3   : > { %p3710_p3 = pnand %p3709_p1, %p5067_p9 }
 0x8d4   : > { %p3715_p0 = por %p3714_p13, %p3713_p12 }
 0x8d5   : > { %p3711_p5 = pneg %p3710_p3 }
 0x8d7   : > { %p3716_p2 = pnand %p3715_p0, %p3711_p5 }
 0x8d9   : > { %3719 = shalt.err (!%p3716_p2)
}
 0x8da   : > { %3434 = dma.vmem_to_hbm [thread:$0]  (%p5067_p9), %s4828_s30, 128, %s4826_s23, %s2791_s21   ;;  %v3414_v53 = vpop.f32.mrf.mxu0 }
 0x8db PF: > { %s5068_s24 = sld [smem:[#allocation19_spill]]  ;;  %p3466_p8 = scmp.ge.s32.totalorder %s3766_s28, 2 }
 0x8dc   : > { %s2816_s17 = sand.u32 1, %s3754_s25  }
 0x8dd   : > { %s2817_s18 = scalar_lea.sflag [#allocation4], %s2816_s17 }
 0x8e1   : > { %p5069_p10 = scmp.ne.s32.totalorder %s5068_s24, 0 }
 0x8e3   : > { %p3454_p11 = pnand %p3466_p8, %p5069_p10 }
 0x8e5   : > { %p3455_p6 = pneg %p3454_p11 }
 0x8e7   : > { %3749 = dma.done.wait (%p3455_p6), %s2817_s18, 128  }
 0x8e8   : > { %3751 = vsyncadd (%p3455_p6), %s2817_s18, 4294967168  ;;  %s5070_s28 = sld [smem:[#allocation17_spill]]  ;;  %s5073_s25 = smov %s3758_s26 }
 0x8e9   : > { %s5071_s19 = sld [smem:[#allocation16_spill]] }
 0x8ea   : > { %s5072_s27 = sld [smem:[#allocation18_spill]] }
 0x8ee   : > { %p28_p4 = scmp.ge.s32.totalorder %s5070_s28, 6  }
 0x8ef   : > { %s5074_s26 = smov %s5071_s19 }
 0x8f0   :  { %30 = sbr.rel (!%p28_p4) target bundleno = 12 (0xc), region = 139 }
 0x8f5   :  { %2822 = vsyncpa [#allocation3], 1 }
 0x8f6   :  { %2824 = vsyncpa [#allocation3 + $0x1], 1 }
 0x8f7   :  { %2825 = vsyncpa [#allocation6], 1 }
 0x8f8   :  { %2826 = vsyncpa [#allocation9], 1 }
 0x8f9   :  { %2827 = vsyncpa [#allocation4], 1 }
 0x8fa   :  { %2829 = vsyncpa [#allocation4 + $0x1], 1 }

</bundles_post_ra>
